<compile_context>
chip_gen: v6e
topology: v6e:2x2x1
jax: 0.10.0
libtpu: 0.0.40
codegen_flags: <defaults>
</compile_context>

<pallas_src>
import functools

import jax
import jax.numpy as jnp
from jax.experimental import pallas as pl
from jax.experimental.pallas import tpu as pltpu

BN_EPS = 1e-5


def _round_up(x, m):
    return ((x + m - 1) // m) * m


# ---------------------------------------------------------------------------
# Pallas kernel: bf16 matmul (f32 accumulate) + folded affine + activation
# ---------------------------------------------------------------------------
def _fused_matmul_kernel(p_ref, w_ref, s_ref, b_ref, o_ref, *, act):
    acc = jnp.dot(p_ref[...], w_ref[...], preferred_element_type=jnp.float32)
    y = acc * s_ref[...] + b_ref[...]          # folded BatchNorm / bias (f32)
    if act == "relu":
        y = jnp.maximum(y, 0.0)
    elif act == "tanh":
        y = jnp.tanh(y)
    else:
        raise ValueError(act)
    o_ref[...] = y.astype(o_ref.dtype)


def fused_matmul(p, w, scale, bias, *, act, out_dtype):
    """(M, K) @ (K, OC) with fused per-column scale/bias and activation.

    Operands are cast to bf16 (MXU-native), accumulation and the epilogue run
    in f32.  K is padded to a multiple of 16, OC to a lane-dense multiple of
    128 (padding contributes zeros / is sliced off)."""
    M, K = p.shape
    OC = w.shape[1]
    Kp = _round_up(K, 16)
    OCp = _round_up(OC, 128)

    # Per-layer row tile; if a single tile would cover everything, split in
    # two so both TensorCores (v7x) get work.
    tm = min(512, _round_up(M, 8))
    if M > 8 and _round_up(M, tm) == tm:
        tm = max(8, _round_up(pl.cdiv(M, 2), 8))
    Mp = _round_up(M, tm)

    p_pad = jnp.pad(p.astype(jnp.bfloat16), ((0, Mp - M), (0, Kp - K)))
    w_pad = jnp.pad(w.astype(jnp.bfloat16), ((0, Kp - K), (0, OCp - OC)))
    s_pad = jnp.pad(scale.astype(jnp.float32), (0, OCp - OC)).reshape(1, OCp)
    b_pad = jnp.pad(bias.astype(jnp.float32), (0, OCp - OC)).reshape(1, OCp)

    out_bytes = jnp.dtype(out_dtype).itemsize
    need = (2 * (tm * Kp * 2 + Kp * OCp * 2 + 2 * OCp * 4 + tm * OCp * out_bytes)
            + tm * OCp * 4)                      # + f32 accumulator headroom
    vmem_limit = int(min(64 * 2**20, max(16 * 2**20, 2 * need)))

    out = pl.pallas_call(
        functools.partial(_fused_matmul_kernel, act=act),
        out_shape=jax.ShapeDtypeStruct((Mp, OCp), out_dtype),
        grid_spec=pltpu.PrefetchScalarGridSpec(
            num_scalar_prefetch=0,
            grid=(Mp // tm,),
            in_specs=[pl.BlockSpec((tm, Kp), lambda i: (i, 0)),
                      pl.BlockSpec((Kp, OCp), lambda i: (0, 0)),   # resident
                      pl.BlockSpec((1, OCp), lambda i: (0, 0)),
                      pl.BlockSpec((1, OCp), lambda i: (0, 0))],
            out_specs=pl.BlockSpec((tm, OCp), lambda i: (i, 0))),
        compiler_params=pltpu.CompilerParams(
            dimension_semantics=("parallel",),
            vmem_limit_bytes=vmem_limit),
    )(p_pad, w_pad, s_pad, b_pad)
    return out[:M, :OC]


# ---------------------------------------------------------------------------
# ConvTranspose2d(k=5, s=2, p=2, out_p=1) via sub-pixel decomposition
# ---------------------------------------------------------------------------
# Output row y = 2*i - 2 + ky (PyTorch ConvT).  Split y = 2*yo + ry:
#   ry = 0 uses taps ky in {4,2,0} over input rows {yo-1, yo, yo+1}
#   ry = 1 uses taps ky in {3,1}   over input rows {yo,   yo+1}
# -> all 4 phases read the same 3x3 window (pad 1) of the input.
_TAPS = {0: ((0, 4), (1, 2), (2, 0)),    # (window offset u, ConvT tap ky)
         1: ((1, 3), (2, 1))}


def _subpixel_weight(w_t):
    """(IC, OC, 5, 5) ConvTranspose2d weight -> (9*IC, 4*OC) matmul weight.

    Rows follow the 3x3-im2col K layout (u, v, ic); columns are phase-major
    (ry, rx, oc) so the output pixel-shuffles with a pure reshape."""
    IC, OC, _, _ = w_t.shape
    wp = jnp.zeros((3, 3, IC, 2, 2, OC), w_t.dtype)
    for ry in range(2):
        for rx in range(2):
            for u, ky in _TAPS[ry]:
                for v, kx in _TAPS[rx]:
                    wp = wp.at[u, v, :, ry, rx, :].set(w_t[:, :, ky, kx])
    return wp.reshape(9 * IC, 4 * OC)


def _im2col3(x_nhwc):
    """3x3 / stride 1 / pad 1 patches: (N, H, W, C) -> (N*H*W, 9*C)."""
    N, H, W, C = x_nhwc.shape
    xp = jnp.pad(x_nhwc, ((0, 0), (1, 1), (1, 1), (0, 0)))
    cols = [xp[:, u:u + H, v:v + W, :] for u in range(3) for v in range(3)]
    patches = jnp.stack(cols, axis=3)            # (N, H, W, 9, C)
    return patches.reshape(N * H * W, 9 * C)


def tconv2x_fused(x_nhwc, w_t, scale, bias, *, act, out_dtype):
    """ConvTranspose2d(5, s2, p2, op1) + per-channel affine + activation as
    one fused Pallas matmul, followed by a pixel shuffle in glue."""
    N, H, W, IC = x_nhwc.shape
    OC = w_t.shape[1]
    patches = _im2col3(x_nhwc)                   # (N*H*W, 9*IC)
    w_mat = _subpixel_weight(w_t)                # (9*IC, 4*OC), phase-major
    y = fused_matmul(patches, w_mat, jnp.tile(scale, 4), jnp.tile(bias, 4),
                     act=act, out_dtype=out_dtype)          # (N*H*W, 4*OC)
    y = y.reshape(N, H, W, 2, 2, OC)
    y = jnp.transpose(y, (0, 1, 3, 2, 4, 5)).reshape(N, 2 * H, 2 * W, OC)
    return y


# ---------------------------------------------------------------------------
# Generator forward (Pallas) and pure-JAX reference
# ---------------------------------------------------------------------------
def generator_forward(x, params):
    """x: (N, in_dim) latent -> (N, 3, 64, 64)."""
    N = x.shape[0]

    # l1: Linear(no bias) + BatchNorm1d(eval, folded) + ReLU
    w, gamma, beta, mean, var = params["l1"]
    s = gamma / jnp.sqrt(var + BN_EPS)
    b = beta - mean * s
    h = fused_matmul(x, jnp.transpose(w), s, b, act="relu",
                     out_dtype=jnp.bfloat16)                 # (N, 8D*16)
    c8 = w.shape[0] // 16
    xh = jnp.transpose(h.reshape(N, c8, 4, 4), (0, 2, 3, 1))  # NHWC (N,4,4,8D)

    # tconv1..3: ConvT + BatchNorm2d(eval, folded) + ReLU
    for name in ("tconv1", "tconv2", "tconv3"):
        w_t, gamma, beta, mean, var = params[name]
        s = gamma / jnp.sqrt(var + BN_EPS)
        b = beta - mean * s
        xh = tconv2x_fused(xh, w_t, s, b, act="relu", out_dtype=jnp.bfloat16)

    # tconv4: ConvT (with bias) + Tanh, f32 output
    w_t, bias = params["tconv4"]
    y = tconv2x_fused(xh, w_t, jnp.ones_like(bias), bias,
                      act="tanh", out_dtype=jnp.float32)
    return jnp.transpose(y, (0, 3, 1, 2))                     # NCHW (N,3,64,64)


def ref_forward(x, params):
    """Pure-JAX/XLA reference.  Operands are quantized to bf16 at the same
    points as the Pallas path (accumulation stays f32), so the comparison
    isolates the kernel / im2col / BN-fold / pixel-shuffle logic."""
    bf = lambda a: a.astype(jnp.bfloat16)

    def bn(h, gamma, beta, mean, var, shape):
        return ((h - mean.reshape(shape)) / jnp.sqrt(var.reshape(shape) + BN_EPS)
                * gamma.reshape(shape) + beta.reshape(shape))

    def conv_t(xc, w_t):
        # ConvTranspose2d(5, s2, p2, op1) == dilated conv with flipped kernel.
        w = jnp.transpose(bf(w_t), (1, 0, 2, 3))[:, :, ::-1, ::-1]
        return jax.lax.conv_general_dilated(
            bf(xc), w, window_strides=(1, 1), padding=((2, 3), (2, 3)),
            lhs_dilation=(2, 2), dimension_numbers=("NCHW", "OIHW", "NCHW"),
            preferred_element_type=jnp.float32)

    N = x.shape[0]
    w, gamma, beta, mean, var = params["l1"]
    h = jnp.dot(bf(x), bf(w).T, preferred_element_type=jnp.float32)
    h = jnp.maximum(bn(h, gamma, beta, mean, var, (1, -1)), 0.0)
    xc = h.reshape(N, -1, 4, 4)

    for name in ("tconv1", "tconv2", "tconv3"):
        w_t, gamma, beta, mean, var = params[name]
        h = conv_t(xc, w_t)
        xc = jnp.maximum(bn(h, gamma, beta, mean, var, (1, -1, 1, 1)), 0.0)

    w_t, bias = params["tconv4"]
    return jnp.tanh(conv_t(xc, w_t) + bias[None, :, None, None])


# ---------------------------------------------------------------------------
# Deterministic synthetic parameters (shapes match the nn.Module)
# ---------------------------------------------------------------------------
def init_params(key, in_dim, out_dim):
    D = out_dim
    ks = jax.random.split(key, 12)

    def bn_params(k, c):
        k1, k2, k3, k4 = jax.random.split(k, 4)
        return (1.0 + 0.1 * jax.random.normal(k1, (c,), jnp.float32),   # gamma
                0.1 * jax.random.normal(k2, (c,), jnp.float32),         # beta
                0.1 * jax.random.normal(k3, (c,), jnp.float32),         # running_mean
                0.5 + jax.random.uniform(k4, (c,), jnp.float32))        # running_var

    params = {}
    feat = D * 8 * 4 * 4
    params["l1"] = (0.1 * jax.random.normal(ks[0], (feat, in_dim), jnp.float32),
                    ) + bn_params(ks[1], feat)
    chans = [(8 * D, 4 * D), (4 * D, 2 * D), (2 * D, D)]
    for i, (ci, co) in enumerate(chans):
        params[f"tconv{i + 1}"] = (
            0.05 * jax.random.normal(ks[2 + 2 * i], (ci, co, 5, 5), jnp.float32),
        ) + bn_params(ks[3 + 2 * i], co)
    params["tconv4"] = (0.05 * jax.random.normal(ks[8], (D, 3, 5, 5), jnp.float32),
                        0.01 * jax.random.normal(ks[9], (3,), jnp.float32))
    return params


if __name__ == "__main__":
    key = jax.random.PRNGKey(0)
    kx, kp = jax.random.split(key)

    N, in_dim, out_dim = 2, 16, 4            # latent dim 16, D=4
    x = jax.random.normal(kx, (N, in_dim), jnp.float32)
    params = init_params(kp, in_dim, out_dim)

    fwd = jax.jit(generator_forward)
    y = jax.block_until_ready(fwd(x, params))
    y_ref = jax.block_until_ready(ref_forward(x, params))

    assert y.shape == (N, 3, 64, 64), y.shape
    max_err = float(jnp.max(jnp.abs(y - y_ref)))
    if max_err > 1e-2:
        raise AssertionError(f"mismatch vs reference, max abs err = {max_err}")

    print("KERNEL_OK")
</pallas_src>

<mosaic_0001>
module attributes {stable_mosaic.version = 11 : i64} {
  func.func @_fused_matmul_kernel(%arg0: i32, %arg1: memref<8x16xbf16, #tpu.memory_space<vmem>>, %arg2: memref<16x512xbf16, #tpu.memory_space<vmem>>, %arg3: memref<1x512xf32, #tpu.memory_space<vmem>>, %arg4: memref<1x512xf32, #tpu.memory_space<vmem>>, %arg5: memref<8x512xbf16, #tpu.memory_space<vmem>>) attributes {dimension_semantics = [#tpu.dimension_semantics<parallel>], iteration_bounds = array<i64: 1>, scalar_prefetch = 0 : i64, scratch_operands = 0 : i64, tpu.core_type = #tpu.core_type<tc>, window_params = [{transform_indices = @transform_0, window_bounds = array<i64: 8, 16>}, {pipeline_mode = #tpu.pipeline_mode<synchronous>, transform_indices = @transform_1, window_bounds = array<i64: 16, 512>}, {pipeline_mode = #tpu.pipeline_mode<synchronous>, transform_indices = @transform_2, window_bounds = array<i64: 1, 512>}, {pipeline_mode = #tpu.pipeline_mode<synchronous>, transform_indices = @transform_3, window_bounds = array<i64: 1, 512>}, {transform_indices = @transform_4, window_bounds = array<i64: 8, 512>}]} {
    %c0 = arith.constant 0 : index
    %c0_0 = arith.constant 0 : index
    %0 = vector.load %arg1[%c0, %c0_0] : memref<8x16xbf16, #tpu.memory_space<vmem>>, vector<8x16xbf16>
    %c0_1 = arith.constant 0 : index
    %c0_2 = arith.constant 0 : index
    %1 = vector.load %arg2[%c0_1, %c0_2] : memref<16x512xbf16, #tpu.memory_space<vmem>>, vector<16x512xbf16>
    %cst = arith.constant dense<0.000000e+00> : vector<8x512xf32>
    %2 = tpu.matmul %0, %1, %cst {dimension_numbers = #tpu.dot_dimension_numbers<[1], [0], [0], [1], [0, 0, 1, 1], [], []>} : vector<8x16xbf16>, vector<16x512xbf16>, vector<8x512xf32> -> vector<8x512xf32>
    %c0_3 = arith.constant 0 : index
    %c0_4 = arith.constant 0 : index
    %3 = vector.load %arg3[%c0_3, %c0_4] : memref<1x512xf32, #tpu.memory_space<vmem>>, vector<1x512xf32>
    %4 = vector.broadcast %3 : vector<1x512xf32> to vector<8x512xf32>
    %5 = arith.mulf %2, %4 : vector<8x512xf32>
    %c0_5 = arith.constant 0 : index
    %c0_6 = arith.constant 0 : index
    %6 = vector.load %arg4[%c0_5, %c0_6] : memref<1x512xf32, #tpu.memory_space<vmem>>, vector<1x512xf32>
    %7 = vector.broadcast %6 : vector<1x512xf32> to vector<8x512xf32>
    %8 = arith.addf %5, %7 : vector<8x512xf32>
    %cst_7 = arith.constant 0.000000e+00 : f32
    %9 = vector.broadcast %cst_7 : f32 to vector<8x512xf32>
    %10 = arith.maximumf %8, %9 : vector<8x512xf32>
    %11 = arith.truncf %10 : vector<8x512xf32> to vector<8x512xbf16>
    %c0_8 = arith.constant 0 : index
    %c0_9 = arith.constant 0 : index
    %12 = vector.load %arg5[%c0_8, %c0_9] : memref<8x512xbf16, #tpu.memory_space<vmem>>, vector<8x512xbf16>
    tpu.vector_store %arg5[%c0_8, %c0_9], %11 {strides = array<i32>} : memref<8x512xbf16, #tpu.memory_space<vmem>>, vector<8x512xbf16>,
    return
  }
  func.func @transform_0(%arg0: i32) -> (i32, i32) {
    %c0_i32 = arith.constant 0 : i32
    %c0_i32_0 = arith.constant 0 : i32
    return %arg0, %c0_i32 : i32, i32
  }
  func.func @transform_1(%arg0: i32) -> (i32, i32) {
    %c0_i32 = arith.constant 0 : i32
    %c0_i32_0 = arith.constant 0 : i32
    %c0_i32_1 = arith.constant 0 : i32
    return %c0_i32, %c0_i32_0 : i32, i32
  }
  func.func @transform_2(%arg0: i32) -> (i32, i32) {
    %c0_i32 = arith.constant 0 : i32
    %c0_i32_0 = arith.constant 0 : i32
    %c0_i32_1 = arith.constant 0 : i32
    return %c0_i32, %c0_i32_0 : i32, i32
  }
  func.func @transform_3(%arg0: i32) -> (i32, i32) {
    %c0_i32 = arith.constant 0 : i32
    %c0_i32_0 = arith.constant 0 : i32
    %c0_i32_1 = arith.constant 0 : i32
    return %c0_i32, %c0_i32_0 : i32, i32
  }
  func.func @transform_4(%arg0: i32) -> (i32, i32) {
    %c0_i32 = arith.constant 0 : i32
    %c0_i32_0 = arith.constant 0 : i32
    return %arg0, %c0_i32 : i32, i32
  }
}

module attributes {stable_mosaic.version = 11 : i64} {
  func.func @_fused_matmul_kernel(%arg0: i32, %arg1: memref<16x288xbf16, #tpu.memory_space<vmem>>, %arg2: memref<288x128xbf16, #tpu.memory_space<vmem>>, %arg3: memref<1x128xf32, #tpu.memory_space<vmem>>, %arg4: memref<1x128xf32, #tpu.memory_space<vmem>>, %arg5: memref<16x128xbf16, #tpu.memory_space<vmem>>) attributes {dimension_semantics = [#tpu.dimension_semantics<parallel>], iteration_bounds = array<i64: 2>, scalar_prefetch = 0 : i64, scratch_operands = 0 : i64, tpu.core_type = #tpu.core_type<tc>, window_params = [{transform_indices = @transform_0, window_bounds = array<i64: 16, 288>}, {pipeline_mode = #tpu.pipeline_mode<synchronous>, transform_indices = @transform_1, window_bounds = array<i64: 288, 128>}, {pipeline_mode = #tpu.pipeline_mode<synchronous>, transform_indices = @transform_2, window_bounds = array<i64: 1, 128>}, {pipeline_mode = #tpu.pipeline_mode<synchronous>, transform_indices = @transform_3, window_bounds = array<i64: 1, 128>}, {transform_indices = @transform_4, window_bounds = array<i64: 16, 128>}]} {
    %c0 = arith.constant 0 : index
    %c0_0 = arith.constant 0 : index
    %0 = vector.load %arg1[%c0, %c0_0] : memref<16x288xbf16, #tpu.memory_space<vmem>>, vector<16x288xbf16>
    %c0_1 = arith.constant 0 : index
    %c0_2 = arith.constant 0 : index
    %1 = vector.load %arg2[%c0_1, %c0_2] : memref<288x128xbf16, #tpu.memory_space<vmem>>, vector<288x128xbf16>
    %cst = arith.constant dense<0.000000e+00> : vector<16x128xf32>
    %2 = tpu.matmul %0, %1, %cst {dimension_numbers = #tpu.dot_dimension_numbers<[1], [0], [0], [1], [0, 0, 1, 1], [], []>} : vector<16x288xbf16>, vector<288x128xbf16>, vector<16x128xf32> -> vector<16x128xf32>
    %c0_3 = arith.constant 0 : index
    %c0_4 = arith.constant 0 : index
    %3 = vector.load %arg3[%c0_3, %c0_4] : memref<1x128xf32, #tpu.memory_space<vmem>>, vector<1x128xf32>
    %4 = vector.broadcast %3 : vector<1x128xf32> to vector<16x128xf32>
    %5 = arith.mulf %2, %4 : vector<16x128xf32>
    %c0_5 = arith.constant 0 : index
    %c0_6 = arith.constant 0 : index
    %6 = vector.load %arg4[%c0_5, %c0_6] : memref<1x128xf32, #tpu.memory_space<vmem>>, vector<1x128xf32>
    %7 = vector.broadcast %6 : vector<1x128xf32> to vector<16x128xf32>
    %8 = arith.addf %5, %7 : vector<16x128xf32>
    %cst_7 = arith.constant 0.000000e+00 : f32
    %9 = vector.broadcast %cst_7 : f32 to vector<16x128xf32>
    %10 = arith.maximumf %8, %9 : vector<16x128xf32>
    %11 = arith.truncf %10 : vector<16x128xf32> to vector<16x128xbf16>
    %c0_8 = arith.constant 0 : index
    %c0_9 = arith.constant 0 : index
    %12 = vector.load %arg5[%c0_8, %c0_9] : memref<16x128xbf16, #tpu.memory_space<vmem>>, vector<16x128xbf16>
    tpu.vector_store %arg5[%c0_8, %c0_9], %11 {strides = array<i32>} : memref<16x128xbf16, #tpu.memory_space<vmem>>, vector<16x128xbf16>,
    return
  }
  func.func @transform_0(%arg0: i32) -> (i32, i32) {
    %c0_i32 = arith.constant 0 : i32
    %c0_i32_0 = arith.constant 0 : i32
    return %arg0, %c0_i32 : i32, i32
  }
  func.func @transform_1(%arg0: i32) -> (i32, i32) {
    %c0_i32 = arith.constant 0 : i32
    %c0_i32_0 = arith.constant 0 : i32
    %c0_i32_1 = arith.constant 0 : i32
    return %c0_i32, %c0_i32_0 : i32, i32
  }
  func.func @transform_2(%arg0: i32) -> (i32, i32) {
    %c0_i32 = arith.constant 0 : i32
    %c0_i32_0 = arith.constant 0 : i32
    %c0_i32_1 = arith.constant 0 : i32
    return %c0_i32, %c0_i32_0 : i32, i32
  }
  func.func @transform_3(%arg0: i32) -> (i32, i32) {
    %c0_i32 = arith.constant 0 : i32
    %c0_i32_0 = arith.constant 0 : i32
    %c0_i32_1 = arith.constant 0 : i32
    return %c0_i32, %c0_i32_0 : i32, i32
  }
  func.func @transform_4(%arg0: i32) -> (i32, i32) {
    %c0_i32 = arith.constant 0 : i32
    %c0_i32_0 = arith.constant 0 : i32
    return %arg0, %c0_i32 : i32, i32
  }
}

module attributes {stable_mosaic.version = 11 : i64} {
  func.func @_fused_matmul_kernel(%arg0: i32, %arg1: memref<64x144xbf16, #tpu.memory_space<vmem>>, %arg2: memref<144x128xbf16, #tpu.memory_space<vmem>>, %arg3: memref<1x128xf32, #tpu.memory_space<vmem>>, %arg4: memref<1x128xf32, #tpu.memory_space<vmem>>, %arg5: memref<64x128xbf16, #tpu.memory_space<vmem>>) attributes {dimension_semantics = [#tpu.dimension_semantics<parallel>], iteration_bounds = array<i64: 2>, scalar_prefetch = 0 : i64, scratch_operands = 0 : i64, tpu.core_type = #tpu.core_type<tc>, window_params = [{transform_indices = @transform_0, window_bounds = array<i64: 64, 144>}, {pipeline_mode = #tpu.pipeline_mode<synchronous>, transform_indices = @transform_1, window_bounds = array<i64: 144, 128>}, {pipeline_mode = #tpu.pipeline_mode<synchronous>, transform_indices = @transform_2, window_bounds = array<i64: 1, 128>}, {pipeline_mode = #tpu.pipeline_mode<synchronous>, transform_indices = @transform_3, window_bounds = array<i64: 1, 128>}, {transform_indices = @transform_4, window_bounds = array<i64: 64, 128>}]} {
    %c0 = arith.constant 0 : index
    %c0_0 = arith.constant 0 : index
    %0 = vector.load %arg1[%c0, %c0_0] : memref<64x144xbf16, #tpu.memory_space<vmem>>, vector<64x144xbf16>
    %c0_1 = arith.constant 0 : index
    %c0_2 = arith.constant 0 : index
    %1 = vector.load %arg2[%c0_1, %c0_2] : memref<144x128xbf16, #tpu.memory_space<vmem>>, vector<144x128xbf16>
    %cst = arith.constant dense<0.000000e+00> : vector<64x128xf32>
    %2 = tpu.matmul %0, %1, %cst {dimension_numbers = #tpu.dot_dimension_numbers<[1], [0], [0], [1], [0, 0, 1, 1], [], []>} : vector<64x144xbf16>, vector<144x128xbf16>, vector<64x128xf32> -> vector<64x128xf32>
    %c0_3 = arith.constant 0 : index
    %c0_4 = arith.constant 0 : index
    %3 = vector.load %arg3[%c0_3, %c0_4] : memref<1x128xf32, #tpu.memory_space<vmem>>, vector<1x128xf32>
    %4 = vector.broadcast %3 : vector<1x128xf32> to vector<64x128xf32>
    %5 = arith.mulf %2, %4 : vector<64x128xf32>
    %c0_5 = arith.constant 0 : index
    %c0_6 = arith.constant 0 : index
    %6 = vector.load %arg4[%c0_5, %c0_6] : memref<1x128xf32, #tpu.memory_space<vmem>>, vector<1x128xf32>
    %7 = vector.broadcast %6 : vector<1x128xf32> to vector<64x128xf32>
    %8 = arith.addf %5, %7 : vector<64x128xf32>
    %cst_7 = arith.constant 0.000000e+00 : f32
    %9 = vector.broadcast %cst_7 : f32 to vector<64x128xf32>
    %10 = arith.maximumf %8, %9 : vector<64x128xf32>
    %11 = arith.truncf %10 : vector<64x128xf32> to vector<64x128xbf16>
    %c0_8 = arith.constant 0 : index
    %c0_9 = arith.constant 0 : index
    %12 = vector.load %arg5[%c0_8, %c0_9] : memref<64x128xbf16, #tpu.memory_space<vmem>>, vector<64x128xbf16>
    tpu.vector_store %arg5[%c0_8, %c0_9], %11 {strides = array<i32>} : memref<64x128xbf16, #tpu.memory_space<vmem>>, vector<64x128xbf16>,
    return
  }
  func.func @transform_0(%arg0: i32) -> (i32, i32) {
    %c0_i32 = arith.constant 0 : i32
    %c0_i32_0 = arith.constant 0 : i32
    return %arg0, %c0_i32 : i32, i32
  }
  func.func @transform_1(%arg0: i32) -> (i32, i32) {
    %c0_i32 = arith.constant 0 : i32
    %c0_i32_0 = arith.constant 0 : i32
    %c0_i32_1 = arith.constant 0 : i32
    return %c0_i32, %c0_i32_0 : i32, i32
  }
  func.func @transform_2(%arg0: i32) -> (i32, i32) {
    %c0_i32 = arith.constant 0 : i32
    %c0_i32_0 = arith.constant 0 : i32
    %c0_i32_1 = arith.constant 0 : i32
    return %c0_i32, %c0_i32_0 : i32, i32
  }
  func.func @transform_3(%arg0: i32) -> (i32, i32) {
    %c0_i32 = arith.constant 0 : i32
    %c0_i32_0 = arith.constant 0 : i32
    %c0_i32_1 = arith.constant 0 : i32
    return %c0_i32, %c0_i32_0 : i32, i32
  }
  func.func @transform_4(%arg0: i32) -> (i32, i32) {
    %c0_i32 = arith.constant 0 : i32
    %c0_i32_0 = arith.constant 0 : i32
    return %arg0, %c0_i32 : i32, i32
  }
}

module attributes {stable_mosaic.version = 11 : i64} {
  func.func @_fused_matmul_kernel(%arg0: i32, %arg1: memref<256x80xbf16, #tpu.memory_space<vmem>>, %arg2: memref<80x128xbf16, #tpu.memory_space<vmem>>, %arg3: memref<1x128xf32, #tpu.memory_space<vmem>>, %arg4: memref<1x128xf32, #tpu.memory_space<vmem>>, %arg5: memref<256x128xbf16, #tpu.memory_space<vmem>>) attributes {dimension_semantics = [#tpu.dimension_semantics<parallel>], iteration_bounds = array<i64: 2>, scalar_prefetch = 0 : i64, scratch_operands = 0 : i64, tpu.core_type = #tpu.core_type<tc>, window_params = [{transform_indices = @transform_0, window_bounds = array<i64: 256, 80>}, {pipeline_mode = #tpu.pipeline_mode<synchronous>, transform_indices = @transform_1, window_bounds = array<i64: 80, 128>}, {pipeline_mode = #tpu.pipeline_mode<synchronous>, transform_indices = @transform_2, window_bounds = array<i64: 1, 128>}, {pipeline_mode = #tpu.pipeline_mode<synchronous>, transform_indices = @transform_3, window_bounds = array<i64: 1, 128>}, {transform_indices = @transform_4, window_bounds = array<i64: 256, 128>}]} {
    %c0 = arith.constant 0 : index
    %c0_0 = arith.constant 0 : index
    %0 = vector.load %arg1[%c0, %c0_0] : memref<256x80xbf16, #tpu.memory_space<vmem>>, vector<256x80xbf16>
    %c0_1 = arith.constant 0 : index
    %c0_2 = arith.constant 0 : index
    %1 = vector.load %arg2[%c0_1, %c0_2] : memref<80x128xbf16, #tpu.memory_space<vmem>>, vector<80x128xbf16>
    %cst = arith.constant dense<0.000000e+00> : vector<256x128xf32>
    %2 = tpu.matmul %0, %1, %cst {dimension_numbers = #tpu.dot_dimension_numbers<[1], [0], [0], [1], [0, 0, 1, 1], [], []>} : vector<256x80xbf16>, vector<80x128xbf16>, vector<256x128xf32> -> vector<256x128xf32>
    %c0_3 = arith.constant 0 : index
    %c0_4 = arith.constant 0 : index
    %3 = vector.load %arg3[%c0_3, %c0_4] : memref<1x128xf32, #tpu.memory_space<vmem>>, vector<1x128xf32>
    %4 = vector.broadcast %3 : vector<1x128xf32> to vector<256x128xf32>
    %5 = arith.mulf %2, %4 : vector<256x128xf32>
    %c0_5 = arith.constant 0 : index
    %c0_6 = arith.constant 0 : index
    %6 = vector.load %arg4[%c0_5, %c0_6] : memref<1x128xf32, #tpu.memory_space<vmem>>, vector<1x128xf32>
    %7 = vector.broadcast %6 : vector<1x128xf32> to vector<256x128xf32>
    %8 = arith.addf %5, %7 : vector<256x128xf32>
    %cst_7 = arith.constant 0.000000e+00 : f32
    %9 = vector.broadcast %cst_7 : f32 to vector<256x128xf32>
    %10 = arith.maximumf %8, %9 : vector<256x128xf32>
    %11 = arith.truncf %10 : vector<256x128xf32> to vector<256x128xbf16>
    %c0_8 = arith.constant 0 : index
    %c0_9 = arith.constant 0 : index
    %12 = vector.load %arg5[%c0_8, %c0_9] : memref<256x128xbf16, #tpu.memory_space<vmem>>, vector<256x128xbf16>
    tpu.vector_store %arg5[%c0_8, %c0_9], %11 {strides = array<i32>} : memref<256x128xbf16, #tpu.memory_space<vmem>>, vector<256x128xbf16>,
    return
  }
  func.func @transform_0(%arg0: i32) -> (i32, i32) {
    %c0_i32 = arith.constant 0 : i32
    %c0_i32_0 = arith.constant 0 : i32
    return %arg0, %c0_i32 : i32, i32
  }
  func.func @transform_1(%arg0: i32) -> (i32, i32) {
    %c0_i32 = arith.constant 0 : i32
    %c0_i32_0 = arith.constant 0 : i32
    %c0_i32_1 = arith.constant 0 : i32
    return %c0_i32, %c0_i32_0 : i32, i32
  }
  func.func @transform_2(%arg0: i32) -> (i32, i32) {
    %c0_i32 = arith.constant 0 : i32
    %c0_i32_0 = arith.constant 0 : i32
    %c0_i32_1 = arith.constant 0 : i32
    return %c0_i32, %c0_i32_0 : i32, i32
  }
  func.func @transform_3(%arg0: i32) -> (i32, i32) {
    %c0_i32 = arith.constant 0 : i32
    %c0_i32_0 = arith.constant 0 : i32
    %c0_i32_1 = arith.constant 0 : i32
    return %c0_i32, %c0_i32_0 : i32, i32
  }
  func.func @transform_4(%arg0: i32) -> (i32, i32) {
    %c0_i32 = arith.constant 0 : i32
    %c0_i32_0 = arith.constant 0 : i32
    return %arg0, %c0_i32 : i32, i32
  }
}

module attributes {stable_mosaic.version = 11 : i64} {
  func.func @_fused_matmul_kernel(%arg0: i32, %arg1: memref<512x48xbf16, #tpu.memory_space<vmem>>, %arg2: memref<48x128xbf16, #tpu.memory_space<vmem>>, %arg3: memref<1x128xf32, #tpu.memory_space<vmem>>, %arg4: memref<1x128xf32, #tpu.memory_space<vmem>>, %arg5: memref<512x128xf32, #tpu.memory_space<vmem>>) attributes {dimension_semantics = [#tpu.dimension_semantics<parallel>], iteration_bounds = array<i64: 4>, scalar_prefetch = 0 : i64, scratch_operands = 0 : i64, tpu.core_type = #tpu.core_type<tc>, window_params = [{transform_indices = @transform_0, window_bounds = array<i64: 512, 48>}, {pipeline_mode = #tpu.pipeline_mode<synchronous>, transform_indices = @transform_1, window_bounds = array<i64: 48, 128>}, {pipeline_mode = #tpu.pipeline_mode<synchronous>, transform_indices = @transform_2, window_bounds = array<i64: 1, 128>}, {pipeline_mode = #tpu.pipeline_mode<synchronous>, transform_indices = @transform_3, window_bounds = array<i64: 1, 128>}, {transform_indices = @transform_4, window_bounds = array<i64: 512, 128>}]} {
    %c0 = arith.constant 0 : index
    %c0_0 = arith.constant 0 : index
    %0 = vector.load %arg1[%c0, %c0_0] : memref<512x48xbf16, #tpu.memory_space<vmem>>, vector<512x48xbf16>
    %c0_1 = arith.constant 0 : index
    %c0_2 = arith.constant 0 : index
    %1 = vector.load %arg2[%c0_1, %c0_2] : memref<48x128xbf16, #tpu.memory_space<vmem>>, vector<48x128xbf16>
    %cst = arith.constant dense<0.000000e+00> : vector<512x128xf32>
    %2 = tpu.matmul %0, %1, %cst {dimension_numbers = #tpu.dot_dimension_numbers<[1], [0], [0], [1], [0, 0, 1, 1], [], []>} : vector<512x48xbf16>, vector<48x128xbf16>, vector<512x128xf32> -> vector<512x128xf32>
    %c0_3 = arith.constant 0 : index
    %c0_4 = arith.constant 0 : index
    %3 = vector.load %arg3[%c0_3, %c0_4] : memref<1x128xf32, #tpu.memory_space<vmem>>, vector<1x128xf32>
    %4 = vector.broadcast %3 : vector<1x128xf32> to vector<512x128xf32>
    %5 = arith.mulf %2, %4 : vector<512x128xf32>
    %c0_5 = arith.constant 0 : index
    %c0_6 = arith.constant 0 : index
    %6 = vector.load %arg4[%c0_5, %c0_6] : memref<1x128xf32, #tpu.memory_space<vmem>>, vector<1x128xf32>
    %7 = vector.broadcast %6 : vector<1x128xf32> to vector<512x128xf32>
    %8 = arith.addf %5, %7 : vector<512x128xf32>
    %9 = math.tanh %8 : vector<512x128xf32>
    %c0_7 = arith.constant 0 : index
    %c0_8 = arith.constant 0 : index
    %10 = vector.load %arg5[%c0_7, %c0_8] : memref<512x128xf32, #tpu.memory_space<vmem>>, vector<512x128xf32>
    tpu.vector_store %arg5[%c0_7, %c0_8], %9 {strides = array<i32>} : memref<512x128xf32, #tpu.memory_space<vmem>>, vector<512x128xf32>,
    return
  }
  func.func @transform_0(%arg0: i32) -> (i32, i32) {
    %c0_i32 = arith.constant 0 : i32
    %c0_i32_0 = arith.constant 0 : i32
    return %arg0, %c0_i32 : i32, i32
  }
  func.func @transform_1(%arg0: i32) -> (i32, i32) {
    %c0_i32 = arith.constant 0 : i32
    %c0_i32_0 = arith.constant 0 : i32
    %c0_i32_1 = arith.constant 0 : i32
    return %c0_i32, %c0_i32_0 : i32, i32
  }
  func.func @transform_2(%arg0: i32) -> (i32, i32) {
    %c0_i32 = arith.constant 0 : i32
    %c0_i32_0 = arith.constant 0 : i32
    %c0_i32_1 = arith.constant 0 : i32
    return %c0_i32, %c0_i32_0 : i32, i32
  }
  func.func @transform_3(%arg0: i32) -> (i32, i32) {
    %c0_i32 = arith.constant 0 : i32
    %c0_i32_0 = arith.constant 0 : i32
    %c0_i32_1 = arith.constant 0 : i32
    return %c0_i32, %c0_i32_0 : i32, i32
  }
  func.func @transform_4(%arg0: i32) -> (i32, i32) {
    %c0_i32 = arith.constant 0 : i32
    %c0_i32_0 = arith.constant 0 : i32
    return %arg0, %c0_i32 : i32, i32
  }
}

</mosaic_0001>

<bundles_post_ra>
// kernel: generator_forward.5
= control target key start
LH: loop header
LB: loop body
LE: loop exit
PB: predicated region body
PF: predicated region fallthrough
CT: control target
= control target key end

     0   :  { %v224_v1 = vmov 0   ;;  %vm43_vm0 = vcmask 130048   ;;  %v131_v6 = vlaneseq  ;;  %s277_s1 = inlined_call_operand.vmem [shape: bf16[16,512], index: 1, kind: input, shape index: {}]   ;;  %s278_s0 = inlined_call_operand.vmem [shape: bf16[8,16], index: 0, kind: input, shape index: {}]   ;;  %s279_s2 = inlined_call_operand.vmem [shape: f32[1,512], index: 2, kind: input, shape index: {}]   ;;  %s280_s3 = inlined_call_operand.vmem [shape: f32[1,512], index: 3, kind: input, shape index: {}]   ;;  %s281_s4 = inlined_call_operand.vmem [shape: bf16[8,512], index: 4, kind: output, shape index: {}]  }
   0x1   :  { %v218_v0 = vld [vmem:[%s277_s1 + $0x4] ss:$16 sps:$4 sm:$0xff]   ;;  %79 = vmatprep.mubr.bf16.mxu0 %v224_v1  ;;  %120 = vmatprep.mubr.bf16.mxu1 %v224_v1  ;;  %v220_v2 = vld [vmem:[%s277_s1 + $0xc] ss:$16 sps:$4 sm:$0xff]   ;;  %v222_v3 = vld [vmem:[%s277_s1] ss:$16 sps:$4 sm:$0xff]  }
   0x2   :  { %61 = vmatprep.subr.bf16.mxu0 %v218_v0  ;;  %v223_v4 = vld [vmem:[%s277_s1 + $0x8] ss:$16 sps:$4 sm:$0xff]   ;;  %102 = vmatprep.subr.bf16.mxu1 %v220_v2  ;;  %v18_v5 = vld [vmem:[%s278_s0] sm:$0xf]  ;;  %v132_v7 = vshrl.u32 %v131_v6, 7 }
   0x3   :  { %62 = vmatpush1.bf16.msra.mxu0 %v222_v3  ;;  %103 = vmatpush1.bf16.msra.mxu1 %v223_v4  ;;  %v129_v10 = vld [vmem:[%s279_s2] sm:$0xf] }
   0x4   :  { %v133_v8 = vsub.s32 0, %v132_v7  ;;  %v141_v9 = vsub.s32 2, %v132_v7  ;;  %v137_v11 = vsub.s32 1, %v132_v7  ;;  %v145_v12 = vsub.s32 3, %v132_v7  ;;  %v155_v13 = vld [vmem:[%s280_s3] sm:$0xf] }
   0x6   :  { %211 = vmatmul.mubr.msk.bf16.vlgmr.msra.gmra.mxu0 %vm43_vm0, %v18_v5  ;;  %212 = vmatmul.mubr.msk.bf16.vlgmr.msra.gmra.mxu1 %vm43_vm0, %v18_v5  ;;  %v134_v14 = vrot.slane %v129_v10, %v133_v8  ;;  %v142_v15 = vrot.slane %v129_v10, %v141_v9  ;;  %v160_v16 = vrot.slane %v155_v13, %v133_v8 }
   0x7   :  { %v168_v17 = vrot.slane %v155_v13, %v141_v9  ;;  %v138_v18 = vrot.slane %v129_v10, %v137_v11  ;;  %v146_v19 = vrot.slane %v129_v10, %v145_v12  ;;  %v164_v24 = vrot.slane %v155_v13, %v137_v11 }
   0x8   :  { %v172_v25 = vrot.slane %v155_v13, %v145_v12 }
  0xc6   :  { %v81_v20 = vpop.f32.mrf.mxu0  ;;  %v122_v21 = vpop.f32.mrf.mxu1 }
  0xc7   :  { %v151_v22 = vmul.f32 %v134_v14, %v81_v20  ;;  %v153_v23 = vmul.f32 %v142_v15, %v122_v21 }
  0xc8   :  { %v83_v26 = vpop.f32.mrf.mxu0  ;;  %v124_v27 = vpop.f32.mrf.mxu1 }
  0xc9   :  { %v177_v28 = vadd.f32 %v160_v16, %v151_v22  ;;  %v179_v29 = vadd.f32 %v168_v17, %v153_v23  ;;  %v152_v30 = vmul.f32 %v138_v18, %v83_v26  ;;  %v154_v31 = vmul.f32 %v146_v19, %v124_v27 }
  0xca   :  { %v85_v32 = vpop.f32.mrf.mxu0  ;;  %v126_v33 = vpop.f32.mrf.mxu1 }
  0xcb   :  { %v178_v34 = vadd.f32 %v164_v24, %v152_v30  ;;  %v180_v35 = vadd.f32 %v172_v25, %v154_v31  ;;  %v181_v38 = vmax.f32 %v177_v28, 0.0  ;;  %v183_v39 = vmax.f32 %v179_v29, 0.0 }
  0xcc   :  { %v86_v36 = vpop.f32.mrf.mxu0  ;;  %v127_v37 = vpop.f32.mrf.mxu1 }
  0xcd   :  { %v182_v40 = vmax.f32 %v178_v34, 0.0  ;;  %v184_v41 = vmax.f32 %v180_v35, 0.0 }
  0xcf   :  { %v215_v42 = vpack.c.bf16 %v182_v40, %v181_v38  ;;  %v216_v43 = vpack.c.bf16 %v184_v41, %v183_v39 }
  0xd1   :  { %201 = vst [vmem:[%s281_s4] sm:$0xff] %v215_v42  ;;  %202 = vst [vmem:[%s281_s4 + $0x8] sm:$0xff] %v216_v43 }

// kernel: tile.38
= control target key start
LH: loop header
LB: loop body
LE: loop exit
PB: predicated region body
PF: predicated region fallthrough
CT: control target
= control target key end

     0   :  { %s22_s0 = inlined_call_operand.vmem [shape: f32[16], index: 0, kind: input, shape index: {}]   ;;  %s23_s1 = inlined_call_operand.vmem [shape: f32[4,16], index: 1, kind: output, shape index: {}]  }
   0x1   :  { %v4_v0 = vld [vmem:[%s22_s0] ss:$0 sm:$0xff] }
   0x2   :  { %5 = vst [vmem:[%s23_s1] sm:$0xf] %v4_v0 }

// kernel: tile.39
= control target key start
LH: loop header
LB: loop body
LE: loop exit
PB: predicated region body
PF: predicated region fallthrough
CT: control target
= control target key end

     0   :  { %vm8_vm0 = vcmask 130048   ;;  %s40_s8 = smov 16   ;;  %s41_s9 = smov 32   ;;  %vm14_vm1 = vcmask 523648   ;;  %vm20_vm2 = vcmask 392448   ;;  %vm26_vm3 = vcmask 261248   ;;  %s58_s0 = inlined_call_operand.vmem [shape: f32[4,16], index: 0, kind: input, shape index: {}]   ;;  %s59_s1 = inlined_call_operand.vmem [shape: f32[64], index: 1, kind: output, shape index: {}]  }
   0x1   :  { %v5_v0 = vld [vmem:[%s58_s0] sm:$0xf]  ;;  %s39_s0 = smov 48  }
   0x2   :  { %6 = vst [vmem:[#allocation1] sm:$0xf] %v5_v0 }
   0x9   :  { %v11_v1 = vld [vmem:[#allocation1 + $0x3] sm:$0x1]   ;;  %v23_v2 = vld [vmem:[#allocation1 + $0x1] sm:$0x1]   ;;  %v7_v3 = vld [vmem:[#allocation1] sm:$0x1]  }
   0xa   :  { %12 = vrot.lane.b32.xlu0 %v11_v1, %s39_s0  ;;  %24 = vrot.lane.b32.xlu1 %v23_v2, %s40_s8  ;;  %v17_v4 = vld [vmem:[#allocation1 + $0x2] sm:$0x1]   ;;  %9 = vst.msk [vmem:[#allocation0] sm:$0x1] %vm8_vm0, %v7_v3  }
   0xe   :  { %18 = vrot.lane.b32.xlu0 %v17_v4, %s41_s9 }
  0x7c   :  { %v13_v5 = vpop.permute.xlu0 %12   ;;  %v25_v6 = vpop.permute.xlu1 %24  }
  0x7d   :  { %15 = vst.msk [vmem:[#allocation0] sm:$0x1] %vm14_vm1, %v13_v5  }
  0x80   :  { %v19_v7 = vpop.permute.xlu0 %18  }
  0x81   :  { %21 = vst.msk [vmem:[#allocation0] sm:$0x1] %vm20_vm2, %v19_v7  }
  0x82   :  { %27 = vst.msk [vmem:[#allocation0] sm:$0x1] %vm26_vm3, %v25_v6  }
  0x89   :  { %v32_v8 = vld [vmem:[#allocation0] sm:$0x1] }
  0x8a   :  { %35 = vst [vmem:[%s59_s1] sm:$0x1] %v32_v8 }

// kernel: generator_forward.6
= control target key start
LH: loop header
LB: loop body
LE: loop exit
PB: predicated region body
PF: predicated region fallthrough
CT: control target
= control target key end

     0   :  { %s685_s15 = smov 0   ;;  %s766_s0 = inlined_call_operand.vmem [shape: bf16[32,288], index: 0, kind: input, shape index: {}]   ;;  %s767_s1 = inlined_call_operand.vmem [shape: bf16[288,128], index: 1, kind: input, shape index: {}]   ;;  %s768_s2 = inlined_call_operand.vmem [shape: f32[1,128], index: 2, kind: input, shape index: {}]   ;;  %s769_s3 = inlined_call_operand.vmem [shape: f32[1,128], index: 3, kind: input, shape index: {}]   ;;  %s770_s4 = inlined_call_operand.vmem [shape: bf16[32,128], index: 4, kind: output, shape index: {}]  }
   0x1 LB: > { %s540_s16 = sadd.s32 4294967295, %s656_s15   ;;  %p544_p0 = scmp.ge.s32.totalorder %s656_s15, 1  ;;  %s656_s15 = sphi %s685_s15, %s14_s15  }
   0x2   : > { %p164_p1 = scmp.lt.s32.totalorder %s656_s15, 3 }
   0x4   : > { %p165_p2 = pnand %p544_p0, %p164_p1 }
   0x5   : > { %s545_s23 = sshll.u32 (!%p165_p2), %s540_s16, 1 }
   0x6   : > { %168 = sbr.rel (%p165_p2) target bundleno = 256 (0x100), region = 36  ;;  %p192_p3 = scmp.lt.s32.totalorder (!%p165_p2), %s545_s23, 3 }
   0xb   : > { %v628_v0 = vld [vmem:[%s767_s1 + $0x78] sm:$0xff]   ;;  %v658_v2 = vmov 0.0   ;;  %v630_v3 = vld [vmem:[%s767_s1 + $0x70] sm:$0xff]   ;;  %vm659_vm0 = vmmov 0   ;;  %v632_v5 = vld [vmem:[%s767_s1 + $0x68] sm:$0xff]   ;;  %s772_s23 = smov (!%p192_p3, %s545_s23), 3 }
   0xc   : > { %v629_v1 = vld [vmem:[%s767_s1 + $0x38] sm:$0xff]   ;;  %609 = vmatprep.subr.bf16.mxu1 %v658_v2  ;;  %584 = vmatprep.subr.bf16.mxu0 %v628_v0  ;;  %v631_v4 = vld [vmem:[%s767_s1 + $0x30] sm:$0xff]   ;;  %v633_v6 = vld [vmem:[%s767_s1 + $0x28] sm:$0xff]   ;;  %s617_s10 = smul.u32 12, %s772_s23  ;;  %vm368_vm1 = vcmask 261120   ;;  %s548_s12 = sshll.u32 %s772_s23, 2 }
   0xd   : > { %613 = vmatprep.mubr.msk.bf16.mxu1 %vm659_vm0, %v658_v2  ;;  %585 = vmatpush3.bf16.msra.mxu0 %v629_v1  ;;  %v634_v7 = vld [vmem:[%s767_s1 + $0x60] sm:$0xff]   ;;  %v636_v9 = vld [vmem:[%s767_s1 + $0x58] sm:$0xff]   ;;  %v640_v10 = vld [vmem:[%s767_s1 + $0x88] sm:$0xff]   ;;  %s202_s16 = scalar_lea.vmem %s770_s4, %s548_s12 }
   0xe   : > { %586 = vmatprep.subr.bf16.mxu0 %v630_v3  ;;  %v635_v8 = vld [vmem:[%s767_s1 + $0x20] sm:$0xff]   ;;  %v637_v11 = vld [vmem:[%s767_s1 + $0x18] sm:$0xff]   ;;  %610 = vmatpush3.bf16.msra.mxu1 %v640_v10  ;;  %s196_s20 = scalar_lea.vmem %s766_s0, %s617_s10  ;;  %v638_v13 = vld [vmem:[%s767_s1 + $0x50] sm:$0xff]  }
   0xf   : > { %611 = vmatprep.subr.bf16.mxu1 %v658_v2  ;;  %v643_v12 = vld [vmem:[%s767_s1 + $0x80] sm:$0xff]   ;;  %v646_v14 = vld [vmem:[%s196_s20 + $0x8] ss:$12 sps:$4 sm:$0xff]  }
  0x10   : > { %v639_v15 = vld [vmem:[%s767_s1 + $0x10] sm:$0xff]   ;;  %v641_v16 = vld [vmem:[%s767_s1 + $0x48] sm:$0xff]   ;;  %v644_v19 = vld [vmem:[%s767_s1 + $0x40] sm:$0xff]  }
  0x11   : > { %587 = vmatpush3.bf16.msra.mxu0 %v631_v4  ;;  %v649_v17 = vld [vmem:[%s196_s20 + $0x4] ss:$12 sps:$4 sm:$0xff]   ;;  %v642_v18 = vld [vmem:[%s767_s1 + $0x8] sm:$0xff]   ;;  %v571_v29 = vld [vmem:[%s768_s2] ss:$0 sm:$0xff] }
  0x12   : > { %588 = vmatprep.subr.bf16.mxu0 %v632_v5  ;;  %612 = vmatpush3.bf16.msra.mxu1 %v643_v12  ;;  %v645_v20 = vld [vmem:[%s767_s1] sm:$0xff]  }
  0x13   : > { %404 = vmatprep.mubr.bf16.mxu0 %v649_v17  ;;  %v647_v21 = vld [vmem:[%s196_s20] ss:$12 sps:$4 sm:$0xff]  }
  0x14   : > { %v572_v35 = vld [vmem:[%s769_s3] ss:$0 sm:$0xff] }
  0x15   : > { %589 = vmatpush3.bf16.msra.mxu0 %v633_v6  ;;  %614 = vmatmul.mubr.msk.bf16.vlgmr.msra.gmra.mxu1 %vm368_vm1, %v646_v14 }
  0x16   : > { %590 = vmatprep.subr.bf16.mxu0 %v634_v7 }
  0x19   : > { %591 = vmatpush3.bf16.msra.mxu0 %v635_v8 }
  0x1a   : > { %592 = vmatprep.subr.bf16.mxu0 %v636_v9 }
  0x1d   : > { %593 = vmatpush3.bf16.msra.mxu0 %v637_v11 }
  0x1e   : > { %594 = vmatprep.subr.bf16.mxu0 %v638_v13 }
  0x21   : > { %595 = vmatpush3.bf16.msra.mxu0 %v639_v15 }
  0x22   : > { %596 = vmatprep.subr.bf16.mxu0 %v641_v16 }
  0x25   : > { %597 = vmatpush3.bf16.msra.mxu0 %v642_v18 }
  0x26   : > { %598 = vmatprep.subr.bf16.mxu0 %v644_v19 }
  0x29   : > { %599 = vmatpush3.bf16.msra.mxu0 %v645_v20 }
  0x2c   : > { %405 = vmatmul.mubr.bf16.vlgmr.msra.gmra.mxu0 %v647_v21 }
  0xd5   : > { %v447_v22 = vpop.f32.mrf.mxu1 }
  0xd7   : > { %v615_v23 = vpop.f32.mrf.mxu1 }
  0xd9   : > { %v450_v24 = vpop.f32.mrf.mxu1 }
  0xdb   : > { %v616_v25 = vpop.f32.mrf.mxu1 }
  0xec   : > { %v600_v26 = vpop.f32.mrf.mxu0 }
  0xee   : > { %v601_v27 = vpop.f32.mrf.mxu0 }
  0xef   : > { %v602_v28 = vadd.f32 %v601_v27, %v600_v26 }
  0xf0   : > { %v603_v30 = vpop.f32.mrf.mxu0 }
  0xf1   : > { %v448_v31 = vadd.f32 %v602_v28, %v447_v22 }
  0xf2   : > { %v604_v32 = vpop.f32.mrf.mxu0 }
  0xf3   : > { %v461_v33 = vmul.f32 %v571_v29, %v448_v31  ;;  %v605_v34 = vadd.f32 %v604_v32, %v603_v30 }
  0xf5   : > { %v451_v36 = vadd.f32 %v605_v34, %v450_v24  ;;  %v470_v37 = vadd.f32 %v572_v35, %v461_v33 }
  0xf7   : > { %v462_v38 = vmul.f32 %v571_v29, %v451_v36  ;;  %v472_v40 = vmax.f32 %v470_v37, 0.0 }
  0xf9   : > { %v471_v39 = vadd.f32 %v572_v35, %v462_v38 }
  0xfb   : > { %v473_v41 = vmax.f32 %v471_v39, 0.0 }
  0xfd   : > { %v582_v42 = vpack.c.bf16 %v473_v41, %v472_v40 }
  0xff   : > { %583 = vst [vmem:[%s202_s16] sm:$0xff] %v582_v42  }
 0x100 PF: > { %s14_s15 = sadd.s32 1, %s656_s15  }
 0x101   : > { %p11_p4 = scmp.ge.s32.totalorder %s14_s15, 4  }
 0x103   :  { %13 = sbr.rel (!%p11_p4) target bundleno = 1 (0x1), region = 66 }

// kernel: tile.48
= control target key start
LH: loop header
LB: loop body
LE: loop exit
PB: predicated region body
PF: predicated region fallthrough
CT: control target
= control target key end

     0   :  { %s22_s0 = inlined_call_operand.vmem [shape: f32[8], index: 0, kind: input, shape index: {}]   ;;  %s23_s1 = inlined_call_operand.vmem [shape: f32[4,8], index: 1, kind: output, shape index: {}]  }
   0x1   :  { %v4_v0 = vld [vmem:[%s22_s0] ss:$0 sm:$0xff] }
   0x2   :  { %5 = vst [vmem:[%s23_s1] sm:$0xf] %v4_v0 }

// kernel: tile.49
= control target key start
LH: loop header
LB: loop body
LE: loop exit
PB: predicated region body
PF: predicated region fallthrough
CT: control target
= control target key end

     0   :  { %vm8_vm0 = vcmask 64512   ;;  %s40_s8 = smov 8   ;;  %s41_s9 = smov 16   ;;  %vm14_vm1 = vcmask 261312   ;;  %vm20_vm2 = vcmask 195712   ;;  %vm26_vm3 = vcmask 130112   ;;  %s58_s0 = inlined_call_operand.vmem [shape: f32[4,8], index: 0, kind: input, shape index: {}]   ;;  %s59_s1 = inlined_call_operand.vmem [shape: f32[32], index: 1, kind: output, shape index: {}]  }
   0x1   :  { %v5_v0 = vld [vmem:[%s58_s0] sm:$0xf]  ;;  %s39_s0 = smov 24  }
   0x2   :  { %6 = vst [vmem:[#allocation1] sm:$0xf] %v5_v0 }
   0x9   :  { %v11_v1 = vld [vmem:[#allocation1 + $0x3] sm:$0x1]   ;;  %v23_v2 = vld [vmem:[#allocation1 + $0x1] sm:$0x1]   ;;  %v7_v3 = vld [vmem:[#allocation1] sm:$0x1]  }
   0xa   :  { %12 = vrot.lane.b32.xlu0 %v11_v1, %s39_s0  ;;  %24 = vrot.lane.b32.xlu1 %v23_v2, %s40_s8  ;;  %v17_v4 = vld [vmem:[#allocation1 + $0x2] sm:$0x1]   ;;  %9 = vst.msk [vmem:[#allocation0] sm:$0x1] %vm8_vm0, %v7_v3  }
   0xe   :  { %18 = vrot.lane.b32.xlu0 %v17_v4, %s41_s9 }
  0x7c   :  { %v13_v5 = vpop.permute.xlu0 %12   ;;  %v25_v6 = vpop.permute.xlu1 %24  }
  0x7d   :  { %15 = vst.msk [vmem:[#allocation0] sm:$0x1] %vm14_vm1, %v13_v5  }
  0x80   :  { %v19_v7 = vpop.permute.xlu0 %18  }
  0x81   :  { %21 = vst.msk [vmem:[#allocation0] sm:$0x1] %vm20_vm2, %v19_v7  }
  0x82   :  { %27 = vst.msk [vmem:[#allocation0] sm:$0x1] %vm26_vm3, %v25_v6  }
  0x89   :  { %v32_v8 = vld [vmem:[#allocation0] sm:$0x1] }
  0x8a   :  { %35 = vst [vmem:[%s59_s1] sm:$0x1] %v32_v8 }

// kernel: generator_forward.7
= control target key start
LH: loop header
LB: loop body
LE: loop exit
PB: predicated region body
PF: predicated region fallthrough
CT: control target
= control target key end

     0   :  { %s690_s15 = smov 0   ;;  %s758_s0 = inlined_call_operand.vmem [shape: bf16[128,144], index: 0, kind: input, shape index: {}]   ;;  %s759_s1 = inlined_call_operand.vmem [shape: bf16[144,128], index: 1, kind: input, shape index: {}]   ;;  %s760_s2 = inlined_call_operand.vmem [shape: f32[1,128], index: 2, kind: input, shape index: {}]   ;;  %s761_s3 = inlined_call_operand.vmem [shape: f32[1,128], index: 3, kind: input, shape index: {}]   ;;  %s762_s4 = inlined_call_operand.vmem [shape: bf16[128,128], index: 4, kind: output, shape index: {}]  }
   0x1 LB: > { %s533_s16 = sadd.s32 4294967295, %s662_s15   ;;  %p537_p0 = scmp.ge.s32.totalorder %s662_s15, 1  ;;  %s662_s15 = sphi %s690_s15, %s14_s15  }
   0x2   : > { %p164_p1 = scmp.lt.s32.totalorder %s662_s15, 3 }
   0x4   : > { %p165_p2 = pnand %p537_p0, %p164_p1 }
   0x5   : > { %s538_s19 = sshll.u32 (!%p165_p2), %s533_s16, 3 }
   0x6   : > { %168 = sbr.rel (%p165_p2) target bundleno = 262 (0x106), region = 36  ;;  %p192_p3 = scmp.lt.s32.totalorder (!%p165_p2), %s538_s19, 15 }
   0xb   : > { %v635_v0 = vld [vmem:[%s759_s1 + $0x38] sm:$0xff]   ;;  %v664_v1 = vmov 0   ;;  %v636_v2 = vld [vmem:[%s759_s1 + $0x30] sm:$0xff]   ;;  %s764_s19 = smov (!%p192_p3, %s538_s19), 15  ;;  %v637_v3 = vld [vmem:[%s759_s1 + $0x28] sm:$0xff]   ;;  %vm321_vm0 = vcmask 130048  }
   0xc   : > { %334 = vmatprep.subr.bf16.mxu0 %v664_v1  ;;  %608 = vmatprep.subr.bf16.mxu1 %v664_v1  ;;  %s576_s24 = sshll.u32 %s764_s19, 3  ;;  %v638_v4 = vld [vmem:[%s759_s1 + $0x20] sm:$0xff]   ;;  %v639_v7 = vld [vmem:[%s759_s1 + $0x18] sm:$0xff]   ;;  %v640_v8 = vld [vmem:[%s759_s1 + $0x10] sm:$0xff]   ;;  %s542_s20 = sshll.u32 %s764_s19, 2 }
   0xd   : > { %335 = vmatpush1.bf16.msra.mxu0 %v635_v0  ;;  %617 = vmatpush1.bf16.msra.mxu1 %v635_v0  ;;  %s713_s27 = scalar_lea.vmem %s758_s0, %s576_s24  ;;  %v641_v9 = vld [vmem:[%s759_s1 + $0x8] sm:$0xff]   ;;  %v642_v10 = vld [vmem:[%s759_s1] sm:$0xff]   ;;  %s202_s23 = scalar_lea.vmem %s762_s4, %s542_s20 }
   0xe   : > { %336 = vmatprep.subr.bf16.mxu0 %v664_v1  ;;  %609 = vmatprep.subr.bf16.mxu1 %v664_v1  ;;  %v646_v5 = vld [vmem:[%s713_s27 + $0x4] ss:$8 sps:$4 sm:$0xff]   ;;  %v644_v12 = vld [vmem:[%s713_s27] ss:$8 sps:$4 sm:$0xff]   ;;  %v650_v14 = vld [vmem:[%s713_s27 + $0x14] ss:$8 sps:$4 sm:$0xff]  }
   0xf   : > { %v649_v6 = vld [vmem:[%s713_s27 + $0x24] ss:$8 sps:$4 sm:$0xff]   ;;  %560 = vmatprep.mubr.msk.bf16.mxu0 %vm321_vm0, %v646_v5  ;;  %v647_v13 = vld [vmem:[%s713_s27 + $0x20] ss:$8 sps:$4 sm:$0xff]   ;;  %v652_v15 = vld [vmem:[%s713_s27 + $0x34] ss:$8 sps:$4 sm:$0xff]  }
  0x10   : > { %562 = vmatprep.mubr.msk.bf16.mxu1 %vm321_vm0, %v649_v6  ;;  %v643_v11 = vld [vmem:[%s759_s1 + $0x40] sm:$0xff]   ;;  %v654_v16 = vld [vmem:[%s713_s27 + $0x10] ss:$8 sps:$4 sm:$0xff]  }
  0x11   : > { %337 = vmatpush1.bf16.msra.mxu0 %v636_v2  ;;  %618 = vmatpush1.bf16.msra.mxu1 %v636_v2  ;;  %v655_v17 = vld [vmem:[%s713_s27 + $0x30] ss:$8 sps:$4 sm:$0xff]   ;;  %v564_v18 = vld [vmem:[%s760_s2] ss:$0 sm:$0xff] }
  0x12   : > { %338 = vmatprep.subr.bf16.mxu0 %v664_v1  ;;  %610 = vmatprep.subr.bf16.mxu1 %v664_v1  ;;  %v565_v22 = vld [vmem:[%s761_s3] ss:$0 sm:$0xff] }
  0x15   : > { %339 = vmatpush1.bf16.msra.mxu0 %v637_v3  ;;  %619 = vmatpush1.bf16.msra.mxu1 %v637_v3 }
  0x16   : > { %340 = vmatprep.subr.bf16.mxu0 %v664_v1  ;;  %611 = vmatprep.subr.bf16.mxu1 %v664_v1 }
  0x19   : > { %341 = vmatpush1.bf16.msra.mxu0 %v638_v4  ;;  %620 = vmatpush1.bf16.msra.mxu1 %v638_v4 }
  0x1a   : > { %342 = vmatprep.subr.bf16.mxu0 %v664_v1  ;;  %612 = vmatprep.subr.bf16.mxu1 %v664_v1 }
  0x1d   : > { %343 = vmatpush1.bf16.msra.mxu0 %v639_v7  ;;  %621 = vmatpush1.bf16.msra.mxu1 %v639_v7 }
  0x1e   : > { %344 = vmatprep.subr.bf16.mxu0 %v664_v1  ;;  %613 = vmatprep.subr.bf16.mxu1 %v664_v1 }
  0x21   : > { %345 = vmatpush1.bf16.msra.mxu0 %v640_v8  ;;  %622 = vmatpush1.bf16.msra.mxu1 %v640_v8 }
  0x22   : > { %346 = vmatprep.subr.bf16.mxu0 %v664_v1  ;;  %614 = vmatprep.subr.bf16.mxu1 %v664_v1 }
  0x25   : > { %347 = vmatpush1.bf16.msra.mxu0 %v641_v9  ;;  %623 = vmatpush1.bf16.msra.mxu1 %v641_v9 }
  0x26   : > { %348 = vmatprep.subr.bf16.mxu0 %v664_v1  ;;  %615 = vmatprep.subr.bf16.mxu1 %v664_v1 }
  0x29   : > { %349 = vmatpush1.bf16.msra.mxu0 %v642_v10  ;;  %624 = vmatpush1.bf16.msra.mxu1 %v642_v10 }
  0x2a   : > { %364 = vmatprep.subr.bf16.mxu0 %v664_v1  ;;  %616 = vmatprep.subr.bf16.mxu1 %v664_v1 }
  0x2d   : > { %365 = vmatpush2.bf16.msra.mxu0 %v643_v11  ;;  %625 = vmatpush2.bf16.msra.mxu1 %v643_v11 }
  0x30   : > { %367 = vmatmul.mubr.bf16.vlgmr.msra.gmra.mxu0 %v644_v12  ;;  %383 = vmatmul.mubr.bf16.vlgmr.msra.gmra.mxu1 %v647_v13 }
  0x31   : > { %561 = vmatprep.mubr.msk.bf16.mxu0 %vm321_vm0, %v650_v14  ;;  %563 = vmatprep.mubr.msk.bf16.mxu1 %vm321_vm0, %v652_v15 }
  0x38   : > { %375 = vmatmul.mubr.bf16.gmra.mxu0 %v654_v16  ;;  %391 = vmatmul.mubr.bf16.gmra.mxu1 %v655_v17 }
  0xf0   : > { %v368_v19 = vpop.f32.mrf.mxu0  ;;  %v384_v20 = vpop.f32.mrf.mxu1 }
  0xf1   : > { %v406_v21 = vmul.f32 %v564_v18, %v368_v19  ;;  %v410_v23 = vmul.f32 %v564_v18, %v384_v20 }
  0xf2   : > { %v370_v24 = vpop.f32.mrf.mxu0  ;;  %v386_v25 = vpop.f32.mrf.mxu1 }
  0xf3   : > { %v421_v26 = vadd.f32 %v565_v22, %v406_v21  ;;  %v425_v27 = vadd.f32 %v565_v22, %v410_v23 }
  0xf4   : > { %v371_v28 = vpop.f32.mrf.mxu0  ;;  %v387_v29 = vpop.f32.mrf.mxu1 }
  0xf5   : > { %v407_v30 = vmul.f32 %v564_v18, %v371_v28  ;;  %v411_v31 = vmul.f32 %v564_v18, %v387_v29  ;;  %v429_v36 = vmax.f32 %v421_v26, 0.0  ;;  %v433_v37 = vmax.f32 %v425_v27, 0.0 }
  0xf6   : > { %v373_v32 = vpop.f32.mrf.mxu0  ;;  %v389_v33 = vpop.f32.mrf.mxu1 }
  0xf7   : > { %v422_v34 = vadd.f32 %v565_v22, %v407_v30  ;;  %v426_v35 = vadd.f32 %v565_v22, %v411_v31 }
  0xf8   : > { %v376_v38 = vpop.f32.mrf.mxu0  ;;  %v392_v39 = vpop.f32.mrf.mxu1 }
  0xf9   : > { %v430_v40 = vmax.f32 %v422_v34, 0.0  ;;  %v434_v41 = vmax.f32 %v426_v35, 0.0  ;;  %v408_v42 = vmul.f32 %v564_v18, %v376_v38  ;;  %v412_v43 = vmul.f32 %v564_v18, %v392_v39 }
  0xfa   : > { %v378_v44 = vpop.f32.mrf.mxu0  ;;  %v394_v45 = vpop.f32.mrf.mxu1 }
  0xfb   : > { %v588_v46 = vpack.c.bf16 %v430_v40, %v429_v36  ;;  %v598_v47 = vpack.c.bf16 %v434_v41, %v433_v37  ;;  %v423_v50 = vadd.f32 %v565_v22, %v408_v42  ;;  %v427_v51 = vadd.f32 %v565_v22, %v412_v43 }
  0xfc   : > { %v379_v48 = vpop.f32.mrf.mxu0  ;;  %v395_v49 = vpop.f32.mrf.mxu1 }
  0xfd   : > { %589 = vst [vmem:[%s202_s23] sm:$0xff] %v588_v46   ;;  %606 = vst [vmem:[%s202_s23 + $0x10] sm:$0xff] %v598_v47   ;;  %v409_v52 = vmul.f32 %v564_v18, %v379_v48  ;;  %v413_v53 = vmul.f32 %v564_v18, %v395_v49  ;;  %v431_v58 = vmax.f32 %v423_v50, 0.0  ;;  %v435_v59 = vmax.f32 %v427_v51, 0.0 }
  0xfe   : > { %v381_v54 = vpop.f32.mrf.mxu0  ;;  %v397_v55 = vpop.f32.mrf.mxu1 }
  0xff   : > { %v424_v56 = vadd.f32 %v565_v22, %v409_v52  ;;  %v428_v57 = vadd.f32 %v565_v22, %v413_v53 }
 0x101   : > { %v432_v60 = vmax.f32 %v424_v56, 0.0  ;;  %v436_v61 = vmax.f32 %v428_v57, 0.0 }
 0x103   : > { %v593_v62 = vpack.c.bf16 %v432_v60, %v431_v58  ;;  %v603_v63 = vpack.c.bf16 %v436_v61, %v435_v59 }
 0x105   : > { %605 = vst [vmem:[%s202_s23 + $0x8] sm:$0xff] %v593_v62   ;;  %607 = vst [vmem:[%s202_s23 + $0x18] sm:$0xff] %v603_v63  }
 0x106 PF: > { %s14_s15 = sadd.s32 1, %s662_s15  }
 0x107   : > { %p11_p4 = scmp.ge.s32.totalorder %s14_s15, 4  }
 0x109   :  { %13 = sbr.rel (!%p11_p4) target bundleno = 1 (0x1), region = 66 }

// kernel: tile.58
= control target key start
LH: loop header
LB: loop body
LE: loop exit
PB: predicated region body
PF: predicated region fallthrough
CT: control target
= control target key end

     0   :  { %s22_s0 = inlined_call_operand.vmem [shape: f32[4], index: 0, kind: input, shape index: {}]   ;;  %s23_s1 = inlined_call_operand.vmem [shape: f32[4,4], index: 1, kind: output, shape index: {}]  }
   0x1   :  { %v4_v0 = vld [vmem:[%s22_s0] ss:$0 sm:$0xff] }
   0x2   :  { %5 = vst [vmem:[%s23_s1] sm:$0xf] %v4_v0 }

// kernel: tile.59
= control target key start
LH: loop header
LB: loop body
LE: loop exit
PB: predicated region body
PF: predicated region fallthrough
CT: control target
= control target key end

     0   :  { %vm8_vm0 = vcmask 31744   ;;  %s40_s8 = smov 4   ;;  %s41_s9 = smov 8   ;;  %vm14_vm1 = vcmask 130144   ;;  %vm20_vm2 = vcmask 97344   ;;  %vm26_vm3 = vcmask 64544   ;;  %s58_s0 = inlined_call_operand.vmem [shape: f32[4,4], index: 0, kind: input, shape index: {}]   ;;  %s59_s1 = inlined_call_operand.vmem [shape: f32[16], index: 1, kind: output, shape index: {}]  }
   0x1   :  { %v5_v0 = vld [vmem:[%s58_s0] sm:$0xf]  ;;  %s39_s0 = smov 12  }
   0x2   :  { %6 = vst [vmem:[#allocation1] sm:$0xf] %v5_v0 }
   0x9   :  { %v11_v1 = vld [vmem:[#allocation1 + $0x3] sm:$0x1]   ;;  %v23_v2 = vld [vmem:[#allocation1 + $0x1] sm:$0x1]   ;;  %v7_v3 = vld [vmem:[#allocation1] sm:$0x1]  }
   0xa   :  { %12 = vrot.lane.b32.xlu0 %v11_v1, %s39_s0  ;;  %24 = vrot.lane.b32.xlu1 %v23_v2, %s40_s8  ;;  %v17_v4 = vld [vmem:[#allocation1 + $0x2] sm:$0x1]   ;;  %9 = vst.msk [vmem:[#allocation0] sm:$0x1] %vm8_vm0, %v7_v3  }
   0xe   :  { %18 = vrot.lane.b32.xlu0 %v17_v4, %s41_s9 }
  0x7c   :  { %v13_v5 = vpop.permute.xlu0 %12   ;;  %v25_v6 = vpop.permute.xlu1 %24  }
  0x7d   :  { %15 = vst.msk [vmem:[#allocation0] sm:$0x1] %vm14_vm1, %v13_v5  }
  0x80   :  { %v19_v7 = vpop.permute.xlu0 %18  }
  0x81   :  { %21 = vst.msk [vmem:[#allocation0] sm:$0x1] %vm20_vm2, %v19_v7  }
  0x82   :  { %27 = vst.msk [vmem:[#allocation0] sm:$0x1] %vm26_vm3, %v25_v6  }
  0x89   :  { %v32_v8 = vld [vmem:[#allocation0] sm:$0x1] }
  0x8a   :  { %35 = vst [vmem:[%s59_s1] sm:$0x1] %v32_v8 }

// kernel: generator_forward.8
= control target key start
LH: loop header
LB: loop body
LE: loop exit
PB: predicated region body
PF: predicated region fallthrough
CT: control target
= control target key end

     0   :  { %s1234_s15 = smov 0   ;;  %s1399_s0 = inlined_call_operand.vmem [shape: bf16[512,80], index: 0, kind: input, shape index: {}]   ;;  %s1400_s1 = inlined_call_operand.vmem [shape: bf16[80,128], index: 1, kind: input, shape index: {}]   ;;  %s1401_s2 = inlined_call_operand.vmem [shape: f32[1,128], index: 2, kind: input, shape index: {}]   ;;  %s1402_s3 = inlined_call_operand.vmem [shape: f32[1,128], index: 3, kind: input, shape index: {}]   ;;  %s1403_s4 = inlined_call_operand.vmem [shape: bf16[512,128], index: 4, kind: output, shape index: {}]  }
   0x1 LB: > { %s890_s16 = sadd.s32 4294967295, %s1207_s15   ;;  %p894_p0 = scmp.ge.s32.totalorder %s1207_s15, 1  ;;  %s1207_s15 = sphi %s1234_s15, %s14_s15  }
   0x2   : > { %p163_p1 = scmp.lt.s32.totalorder %s1207_s15, 3 }
   0x4   : > { %p164_p2 = pnand %p894_p0, %p163_p1 }
   0x5   : > { %s895_s19 = sshll.u32 (!%p164_p2), %s890_s16, 5 }
   0x6   : > { %167 = sbr.rel (%p164_p2) target bundleno = 264 (0x108), region = 36  ;;  %p190_p3 = scmp.lt.s32.totalorder (!%p164_p2), %s895_s19, 63 }
   0xb   : > { %v1180_v0 = vld [vmem:[%s1400_s1 + $0x20] sm:$0xff]   ;;  %v1181_v1 = vld [vmem:[%s1400_s1 + $0x18] sm:$0xff]   ;;  %s1405_s19 = smov (!%p190_p3, %s895_s19), 63  ;;  %v1182_v2 = vld [vmem:[%s1400_s1 + $0x10] sm:$0xff]   ;;  %vm354_vm0 = vcmask 654336  }
   0xc   : > { %1120 = vmatprep.subr.bf16.mxu0 %v1180_v0  ;;  %1162 = vmatprep.subr.bf16.mxu1 %v1180_v0  ;;  %s896_s24 = sshll.u32 %s1405_s19, 2  ;;  %v1183_v3 = vld [vmem:[%s1400_s1 + $0x8] sm:$0xff]   ;;  %v1184_v6 = vld [vmem:[%s1400_s1] sm:$0xff]  }
   0xd   : > { %1121 = vmatpush3.bf16.msra.mxu0 %v1180_v0  ;;  %1167 = vmatpush3.bf16.msra.mxu1 %v1180_v0  ;;  %s1262_s29 = scalar_lea.vmem %s1399_s0, %s896_s24  ;;  %v1302_v21 = vld [vmem:[%s1401_s2] ss:$0 sm:$0xff]  ;;  %s1332_s12 = scalar_lea.vmem %s1403_s4, %s896_s24 }
   0xe   : > { %1122 = vmatprep.subr.bf16.mxu0 %v1181_v1  ;;  %1163 = vmatprep.subr.bf16.mxu1 %v1181_v1  ;;  %v1185_v4 = vld [vmem:[%s1262_s29] sm:$0xff]   ;;  %v1187_v7 = vld [vmem:[%s1262_s29 + $0x8] sm:$0xff]   ;;  %v1189_v9 = vld [vmem:[%s1262_s29 + $0x10] sm:$0xff]  }
   0xf   : > { %v1186_v5 = vld [vmem:[%s1262_s29 + $0x40] sm:$0xff]   ;;  %1130 = vmatprep.mubr.msk.bf16.mxu0 %vm354_vm0, %v1185_v4  ;;  %v1188_v8 = vld [vmem:[%s1262_s29 + $0x48] sm:$0xff]   ;;  %v1190_v10 = vld [vmem:[%s1262_s29 + $0x50] sm:$0xff]  }
  0x10   : > { %1146 = vmatprep.mubr.msk.bf16.mxu1 %vm354_vm0, %v1186_v5  ;;  %v1191_v11 = vld [vmem:[%s1262_s29 + $0x18] sm:$0xff]   ;;  %v1193_v13 = vld [vmem:[%s1262_s29 + $0x20] sm:$0xff]   ;;  %v1195_v15 = vld [vmem:[%s1262_s29 + $0x28] sm:$0xff]  }
  0x11   : > { %1123 = vmatpush3.bf16.msra.mxu0 %v1181_v1  ;;  %1168 = vmatpush3.bf16.msra.mxu1 %v1181_v1  ;;  %v1192_v12 = vld [vmem:[%s1262_s29 + $0x58] sm:$0xff]   ;;  %v1194_v14 = vld [vmem:[%s1262_s29 + $0x60] sm:$0xff]   ;;  %v1196_v16 = vld [vmem:[%s1262_s29 + $0x68] sm:$0xff]  }
  0x12   : > { %1124 = vmatprep.subr.bf16.mxu0 %v1182_v2  ;;  %1164 = vmatprep.subr.bf16.mxu1 %v1182_v2  ;;  %v1197_v17 = vld [vmem:[%s1262_s29 + $0x30] sm:$0xff]   ;;  %v1199_v19 = vld [vmem:[%s1262_s29 + $0x38] sm:$0xff]   ;;  %v1309_v26 = vld [vmem:[%s1402_s3] ss:$0 sm:$0xff] }
  0x13   : > { %v1198_v18 = vld [vmem:[%s1262_s29 + $0x70] sm:$0xff]   ;;  %v1200_v20 = vld [vmem:[%s1262_s29 + $0x78] sm:$0xff]  }
  0x15   : > { %1125 = vmatpush3.bf16.msra.mxu0 %v1182_v2  ;;  %1169 = vmatpush3.bf16.msra.mxu1 %v1182_v2 }
  0x16   : > { %1126 = vmatprep.subr.bf16.mxu0 %v1183_v3  ;;  %1165 = vmatprep.subr.bf16.mxu1 %v1183_v3 }
  0x19   : > { %1127 = vmatpush3.bf16.msra.mxu0 %v1183_v3  ;;  %1170 = vmatpush3.bf16.msra.mxu1 %v1183_v3 }
  0x1a   : > { %1128 = vmatprep.subr.bf16.mxu0 %v1184_v6  ;;  %1166 = vmatprep.subr.bf16.mxu1 %v1184_v6 }
  0x1d   : > { %1129 = vmatpush3.bf16.msra.mxu0 %v1184_v6  ;;  %1171 = vmatpush3.bf16.msra.mxu1 %v1184_v6 }
  0x20   : > { %1131 = vmatmul.mubr.msk.bf16.vlgmr.msra.gmra.mxu0 %vm354_vm0, %v1187_v7  ;;  %1147 = vmatmul.mubr.msk.bf16.vlgmr.msra.gmra.mxu1 %vm354_vm0, %v1188_v8 }
  0x21   : > { %1134 = vmatprep.mubr.msk.bf16.mxu0 %vm354_vm0, %v1189_v9  ;;  %1150 = vmatprep.mubr.msk.bf16.mxu1 %vm354_vm0, %v1190_v10 }
  0x28   : > { %1135 = vmatmul.mubr.msk.bf16.gmra.mxu0 %vm354_vm0, %v1191_v11  ;;  %1151 = vmatmul.mubr.msk.bf16.gmra.mxu1 %vm354_vm0, %v1192_v12 }
  0x29   : > { %1138 = vmatprep.mubr.msk.bf16.mxu0 %vm354_vm0, %v1193_v13  ;;  %1154 = vmatprep.mubr.msk.bf16.mxu1 %vm354_vm0, %v1194_v14 }
  0x30   : > { %1139 = vmatmul.mubr.msk.bf16.gmra.mxu0 %vm354_vm0, %v1195_v15  ;;  %1155 = vmatmul.mubr.msk.bf16.gmra.mxu1 %vm354_vm0, %v1196_v16 }
  0x31   : > { %1142 = vmatprep.mubr.msk.bf16.mxu0 %vm354_vm0, %v1197_v17  ;;  %1158 = vmatprep.mubr.msk.bf16.mxu1 %vm354_vm0, %v1198_v18 }
  0x38   : > { %1143 = vmatmul.mubr.msk.bf16.gmra.mxu0 %vm354_vm0, %v1199_v19  ;;  %1159 = vmatmul.mubr.msk.bf16.gmra.mxu1 %vm354_vm0, %v1200_v20 }
  0xe0   : > { %v1132_v22 = vpop.f32.mrf.mxu0  ;;  %v1148_v23 = vpop.f32.mrf.mxu1 }
  0xe1   : > { %v573_v24 = vmul.f32 %v1132_v22, %v1302_v21  ;;  %v589_v25 = vmul.f32 %v1148_v23, %v1302_v21 }
  0xe2   : > { %v437_v27 = vpop.f32.mrf.mxu0  ;;  %v501_v28 = vpop.f32.mrf.mxu1 }
  0xe3   : > { %v571_v29 = vmul.f32 %v1302_v21, %v437_v27  ;;  %v587_v30 = vmul.f32 %v1302_v21, %v501_v28  ;;  %v612_v33 = vadd.f32 %v1309_v26, %v573_v24  ;;  %v628_v34 = vadd.f32 %v1309_v26, %v589_v25 }
  0xe4   : > { %v1133_v31 = vpop.f32.mrf.mxu0  ;;  %v1149_v32 = vpop.f32.mrf.mxu1 }
  0xe5   : > { %v574_v35 = vmul.f32 %v1133_v31, %v1302_v21  ;;  %v590_v36 = vmul.f32 %v1149_v32, %v1302_v21  ;;  %v610_v39 = vadd.f32 %v1309_v26, %v571_v29  ;;  %v626_v40 = vadd.f32 %v1309_v26, %v587_v30 }
  0xe6   : > { %v440_v37 = vpop.f32.mrf.mxu0  ;;  %v504_v38 = vpop.f32.mrf.mxu1  ;;  %v644_v47 = vmax.f32 %v612_v33, 0.0  ;;  %v660_v48 = vmax.f32 %v628_v34, 0.0 }
  0xe7   : > { %v572_v41 = vmul.f32 %v1302_v21, %v440_v37  ;;  %v588_v42 = vmul.f32 %v1302_v21, %v504_v38  ;;  %v613_v43 = vadd.f32 %v1309_v26, %v574_v35  ;;  %v629_v44 = vadd.f32 %v1309_v26, %v590_v36 }
  0xe8   : > { %v1136_v45 = vpop.f32.mrf.mxu0  ;;  %v1152_v46 = vpop.f32.mrf.mxu1  ;;  %v642_v57 = vmax.f32 %v610_v39, 0.0  ;;  %v658_v58 = vmax.f32 %v626_v40, 0.0 }
  0xe9   : > { %v611_v49 = vadd.f32 %v1309_v26, %v572_v41  ;;  %v627_v50 = vadd.f32 %v1309_v26, %v588_v42  ;;  %v645_v51 = vmax.f32 %v613_v43, 0.0  ;;  %v661_v52 = vmax.f32 %v629_v44, 0.0 }
  0xea   : > { %v577_v53 = vmul.f32 %v1136_v45, %v1302_v21  ;;  %v593_v54 = vmul.f32 %v1152_v46, %v1302_v21  ;;  %v453_v55 = vpop.f32.mrf.mxu0  ;;  %v517_v56 = vpop.f32.mrf.mxu1 }
  0xeb   : > { %v643_v59 = vmax.f32 %v611_v49, 0.0  ;;  %v659_v60 = vmax.f32 %v627_v50, 0.0  ;;  %v1012_v61 = vpack.c.bf16 %v645_v51, %v644_v47  ;;  %v1052_v62 = vpack.c.bf16 %v661_v52, %v660_v48 }
  0xec   : > { %v575_v63 = vmul.f32 %v1302_v21, %v453_v55  ;;  %v591_v0 = vmul.f32 %v1302_v21, %v517_v56  ;;  %v1137_v1 = vpop.f32.mrf.mxu0  ;;  %v1153_v2 = vpop.f32.mrf.mxu1  ;;  %v616_v5 = vadd.f32 %v1309_v26, %v577_v53  ;;  %v632_v6 = vadd.f32 %v1309_v26, %v593_v54 }
  0xed   : > { %v1007_v3 = vpack.c.bf16 %v643_v59, %v642_v57  ;;  %v1047_v4 = vpack.c.bf16 %v659_v60, %v658_v58  ;;  %1084 = vst [vmem:[%s1332_s12 + $0x8] sm:$0xff] %v1012_v61   ;;  %1092 = vst [vmem:[%s1332_s12 + $0x48] sm:$0xff] %v1052_v62   ;;  %v578_v7 = vmul.f32 %v1137_v1, %v1302_v21 }
  0xee   : > { %v594_v8 = vmul.f32 %v1153_v2, %v1302_v21  ;;  %v456_v9 = vpop.f32.mrf.mxu0  ;;  %v520_v10 = vpop.f32.mrf.mxu1  ;;  %v614_v11 = vadd.f32 %v1309_v26, %v575_v63  ;;  %v630_v12 = vadd.f32 %v1309_v26, %v591_v0  ;;  %v648_v24 = vmax.f32 %v616_v5, 0.0 }
  0xef   : > { %1008 = vst [vmem:[%s1332_s12] sm:$0xff] %v1007_v3   ;;  %1091 = vst [vmem:[%s1332_s12 + $0x40] sm:$0xff] %v1047_v4   ;;  %v576_v13 = vmul.f32 %v1302_v21, %v456_v9  ;;  %v592_v14 = vmul.f32 %v1302_v21, %v520_v10  ;;  %v617_v15 = vadd.f32 %v1309_v26, %v578_v7  ;;  %v664_v25 = vmax.f32 %v632_v6, 0.0 }
  0xf0   : > { %v633_v16 = vadd.f32 %v1309_v26, %v594_v8  ;;  %v1140_v17 = vpop.f32.mrf.mxu0  ;;  %v1156_v18 = vpop.f32.mrf.mxu1  ;;  %v646_v31 = vmax.f32 %v614_v11, 0.0  ;;  %v662_v32 = vmax.f32 %v630_v12, 0.0 }
  0xf1   : > { %v615_v19 = vadd.f32 %v1309_v26, %v576_v13  ;;  %v631_v20 = vadd.f32 %v1309_v26, %v592_v14  ;;  %v581_v22 = vmul.f32 %v1140_v17, %v1302_v21  ;;  %v597_v23 = vmul.f32 %v1156_v18, %v1302_v21 }
  0xf2   : > { %v649_v27 = vmax.f32 %v617_v15, 0.0  ;;  %v665_v28 = vmax.f32 %v633_v16, 0.0  ;;  %v469_v29 = vpop.f32.mrf.mxu0  ;;  %v533_v30 = vpop.f32.mrf.mxu1 }
  0xf3   : > { %v647_v33 = vmax.f32 %v615_v19, 0.0  ;;  %v663_v34 = vmax.f32 %v631_v20, 0.0  ;;  %v579_v37 = vmul.f32 %v1302_v21, %v469_v29  ;;  %v595_v38 = vmul.f32 %v1302_v21, %v533_v30 }
  0xf4   : > { %v1022_v35 = vpack.c.bf16 %v649_v27, %v648_v24  ;;  %v1062_v36 = vpack.c.bf16 %v665_v28, %v664_v25  ;;  %v1141_v39 = vpop.f32.mrf.mxu0  ;;  %v1157_v40 = vpop.f32.mrf.mxu1  ;;  %v620_v43 = vadd.f32 %v1309_v26, %v581_v22  ;;  %v636_v44 = vadd.f32 %v1309_v26, %v597_v23 }
  0xf5   : > { %v1017_v41 = vpack.c.bf16 %v647_v33, %v646_v31  ;;  %v1057_v42 = vpack.c.bf16 %v663_v34, %v662_v32  ;;  %v582_v45 = vmul.f32 %v1141_v39, %v1302_v21  ;;  %v598_v46 = vmul.f32 %v1157_v40, %v1302_v21 }
  0xf6   : > { %1086 = vst [vmem:[%s1332_s12 + $0x18] sm:$0xff] %v1022_v35   ;;  %1094 = vst [vmem:[%s1332_s12 + $0x58] sm:$0xff] %v1062_v36   ;;  %v472_v47 = vpop.f32.mrf.mxu0  ;;  %v536_v48 = vpop.f32.mrf.mxu1  ;;  %v618_v49 = vadd.f32 %v1309_v26, %v579_v37  ;;  %v634_v50 = vadd.f32 %v1309_v26, %v595_v38  ;;  %v652_v57 = vmax.f32 %v620_v43, 0.0  ;;  %v668_v58 = vmax.f32 %v636_v44, 0.0 }
  0xf7   : > { %1085 = vst [vmem:[%s1332_s12 + $0x10] sm:$0xff] %v1017_v41   ;;  %1093 = vst [vmem:[%s1332_s12 + $0x50] sm:$0xff] %v1057_v42   ;;  %v580_v51 = vmul.f32 %v1302_v21, %v472_v47  ;;  %v596_v52 = vmul.f32 %v1302_v21, %v536_v48  ;;  %v621_v53 = vadd.f32 %v1309_v26, %v582_v45 }
  0xf8   : > { %v637_v54 = vadd.f32 %v1309_v26, %v598_v46  ;;  %v1144_v55 = vpop.f32.mrf.mxu0  ;;  %v1160_v56 = vpop.f32.mrf.mxu1  ;;  %v650_v3 = vmax.f32 %v618_v49, 0.0  ;;  %v666_v4 = vmax.f32 %v634_v50, 0.0 }
  0xf9   : > { %v619_v59 = vadd.f32 %v1309_v26, %v580_v51  ;;  %v635_v60 = vadd.f32 %v1309_v26, %v596_v52  ;;  %v653_v61 = vmax.f32 %v621_v53, 0.0  ;;  %v585_v63 = vmul.f32 %v1144_v55, %v1302_v21 }
  0xfa   : > { %v669_v62 = vmax.f32 %v637_v54, 0.0  ;;  %v601_v0 = vmul.f32 %v1160_v56, %v1302_v21  ;;  %v485_v1 = vpop.f32.mrf.mxu0  ;;  %v549_v2 = vpop.f32.mrf.mxu1 }
  0xfb   : > { %v651_v5 = vmax.f32 %v619_v59, 0.0  ;;  %v667_v6 = vmax.f32 %v635_v60, 0.0  ;;  %v1032_v7 = vpack.c.bf16 %v653_v61, %v652_v57  ;;  %v583_v9 = vmul.f32 %v1302_v21, %v485_v1 }
  0xfc   : > { %v1072_v8 = vpack.c.bf16 %v669_v62, %v668_v58  ;;  %v599_v10 = vmul.f32 %v1302_v21, %v549_v2  ;;  %v1145_v11 = vpop.f32.mrf.mxu0  ;;  %v1161_v12 = vpop.f32.mrf.mxu1  ;;  %v624_v15 = vadd.f32 %v1309_v26, %v585_v63  ;;  %v640_v16 = vadd.f32 %v1309_v26, %v601_v0 }
  0xfd   : > { %v1027_v13 = vpack.c.bf16 %v651_v5, %v650_v3  ;;  %v1067_v14 = vpack.c.bf16 %v667_v6, %v666_v4  ;;  %1088 = vst [vmem:[%s1332_s12 + $0x28] sm:$0xff] %v1032_v7   ;;  %v586_v17 = vmul.f32 %v1145_v11, %v1302_v21  ;;  %v602_v18 = vmul.f32 %v1161_v12, %v1302_v21 }
  0xfe   : > { %1096 = vst [vmem:[%s1332_s12 + $0x68] sm:$0xff] %v1072_v8   ;;  %v488_v19 = vpop.f32.mrf.mxu0  ;;  %v552_v20 = vpop.f32.mrf.mxu1  ;;  %v622_v22 = vadd.f32 %v1309_v26, %v583_v9  ;;  %v638_v23 = vadd.f32 %v1309_v26, %v599_v10  ;;  %v656_v31 = vmax.f32 %v624_v15, 0.0  ;;  %v672_v32 = vmax.f32 %v640_v16, 0.0 }
  0xff   : > { %1087 = vst [vmem:[%s1332_s12 + $0x20] sm:$0xff] %v1027_v13   ;;  %1095 = vst [vmem:[%s1332_s12 + $0x60] sm:$0xff] %v1067_v14   ;;  %v584_v24 = vmul.f32 %v1302_v21, %v488_v19  ;;  %v600_v25 = vmul.f32 %v1302_v21, %v552_v20  ;;  %v625_v27 = vadd.f32 %v1309_v26, %v586_v17 }
 0x100   : > { %v641_v28 = vadd.f32 %v1309_v26, %v602_v18  ;;  %v654_v35 = vmax.f32 %v622_v22, 0.0  ;;  %v670_v36 = vmax.f32 %v638_v23, 0.0 }
 0x101   : > { %v623_v29 = vadd.f32 %v1309_v26, %v584_v24  ;;  %v639_v30 = vadd.f32 %v1309_v26, %v600_v25  ;;  %v657_v33 = vmax.f32 %v625_v27, 0.0 }
 0x102   : > { %v673_v34 = vmax.f32 %v641_v28, 0.0 }
 0x103   : > { %v655_v37 = vmax.f32 %v623_v29, 0.0  ;;  %v671_v21 = vmax.f32 %v639_v30, 0.0  ;;  %v1042_v38 = vpack.c.bf16 %v657_v33, %v656_v31 }
 0x104   : > { %v1082_v39 = vpack.c.bf16 %v673_v34, %v672_v32 }
 0x105   : > { %v1037_v40 = vpack.c.bf16 %v655_v37, %v654_v35  ;;  %v1077_v41 = vpack.c.bf16 %v671_v21, %v670_v36  ;;  %1090 = vst [vmem:[%s1332_s12 + $0x38] sm:$0xff] %v1042_v38  }
 0x106   : > { %1098 = vst [vmem:[%s1332_s12 + $0x78] sm:$0xff] %v1082_v39  }
 0x107   : > { %1089 = vst [vmem:[%s1332_s12 + $0x30] sm:$0xff] %v1037_v40   ;;  %1097 = vst [vmem:[%s1332_s12 + $0x70] sm:$0xff] %v1077_v41  }
 0x108 PF: > { %s14_s15 = sadd.s32 1, %s1207_s15  }
 0x109   : > { %p11_p4 = scmp.ge.s32.totalorder %s14_s15, 4  }
 0x10b   :  { %13 = sbr.rel (!%p11_p4) target bundleno = 1 (0x1), region = 66 }

// kernel: tile.68
= control target key start
LH: loop header
LB: loop body
LE: loop exit
PB: predicated region body
PF: predicated region fallthrough
CT: control target
= control target key end

     0   :  { %s22_s0 = inlined_call_operand.vmem [shape: f32[3], index: 0, kind: input, shape index: {}]   ;;  %s23_s1 = inlined_call_operand.vmem [shape: f32[4,3], index: 1, kind: output, shape index: {}]  }
   0x1   :  { %v4_v0 = vld [vmem:[%s22_s0] ss:$0 sm:$0xff] }
   0x2   :  { %5 = vst [vmem:[%s23_s1] sm:$0xf] %v4_v0 }

// kernel: tile.69
= control target key start
LH: loop header
LB: loop body
LE: loop exit
PB: predicated region body
PF: predicated region fallthrough
CT: control target
= control target key end

     0   :  { %vm8_vm0 = vcmask 23552   ;;  %s40_s8 = smov 3   ;;  %s41_s9 = smov 6   ;;  %vm14_vm1 = vcmask 97352   ;;  %vm20_vm2 = vcmask 72752   ;;  %vm26_vm3 = vcmask 48152   ;;  %s58_s0 = inlined_call_operand.vmem [shape: f32[4,3], index: 0, kind: input, shape index: {}]   ;;  %s59_s1 = inlined_call_operand.vmem [shape: f32[12], index: 1, kind: output, shape index: {}]  }
   0x1   :  { %v5_v0 = vld [vmem:[%s58_s0] sm:$0xf]  ;;  %s39_s0 = smov 9  }
   0x2   :  { %6 = vst [vmem:[#allocation1] sm:$0xf] %v5_v0 }
   0x9   :  { %v11_v1 = vld [vmem:[#allocation1 + $0x3] sm:$0x1]   ;;  %v23_v2 = vld [vmem:[#allocation1 + $0x1] sm:$0x1]   ;;  %v7_v3 = vld [vmem:[#allocation1] sm:$0x1]  }
   0xa   :  { %12 = vrot.lane.b32.xlu0 %v11_v1, %s39_s0  ;;  %24 = vrot.lane.b32.xlu1 %v23_v2, %s40_s8  ;;  %v17_v4 = vld [vmem:[#allocation1 + $0x2] sm:$0x1]   ;;  %9 = vst.msk [vmem:[#allocation0] sm:$0x1] %vm8_vm0, %v7_v3  }
   0xe   :  { %18 = vrot.lane.b32.xlu0 %v17_v4, %s41_s9 }
  0x7c   :  { %v13_v5 = vpop.permute.xlu0 %12   ;;  %v25_v6 = vpop.permute.xlu1 %24  }
  0x7d   :  { %15 = vst.msk [vmem:[#allocation0] sm:$0x1] %vm14_vm1, %v13_v5  }
  0x80   :  { %v19_v7 = vpop.permute.xlu0 %18  }
  0x81   :  { %21 = vst.msk [vmem:[#allocation0] sm:$0x1] %vm20_vm2, %v19_v7  }
  0x82   :  { %27 = vst.msk [vmem:[#allocation0] sm:$0x1] %vm26_vm3, %v25_v6  }
  0x89   :  { %v32_v8 = vld [vmem:[#allocation0] sm:$0x1] }
  0x8a   :  { %35 = vst [vmem:[%s59_s1] sm:$0x1] %v32_v8 }

// kernel: generator_forward.9
= control target key start
LH: loop header
LB: loop body
LE: loop exit
PB: predicated region body
PF: predicated region fallthrough
CT: control target
= control target key end

     0   :  { %s1557_s15 = smov 0   ;;  %s1857_s0 = inlined_call_operand.vmem [shape: bf16[2048,48], index: 0, kind: input, shape index: {}]   ;;  %s1858_s1 = inlined_call_operand.vmem [shape: bf16[48,128], index: 1, kind: input, shape index: {}]   ;;  %s1859_s2 = inlined_call_operand.vmem [shape: f32[1,128], index: 2, kind: input, shape index: {}]   ;;  %s1860_s3 = inlined_call_operand.vmem [shape: f32[1,128], index: 3, kind: input, shape index: {}]   ;;  %s1861_s4 = inlined_call_operand.vmem [shape: f32[2048,128], index: 4, kind: output, shape index: {}]  }
   0x1 LB: > { %s1162_s16 = sadd.s32 4294967295, %s1530_s15   ;;  %p1166_p0 = scmp.ge.s32.totalorder %s1530_s15, 1  ;;  %s1530_s15 = sphi %s1557_s15, %s14_s15  }
   0x2   : > { %p163_p1 = scmp.lt.s32.totalorder %s1530_s15, 5 }
   0x4   : > { %p164_p2 = pnand %p1166_p0, %p163_p1 }
   0x5   : > { %s1167_s19 = sshll.u32 (!%p164_p2), %s1162_s16, 6 }
   0x6   : > { %167 = sbr.rel (%p164_p2) target bundleno = 299 (0x12b), region = 36  ;;  %p190_p3 = scmp.lt.s32.totalorder (!%p164_p2), %s1167_s19, 255 }
   0xb   : > { %v1361_v0 = vld [vmem:[%s1858_s1 + $0x10] sm:$0xff]   ;;  %v1362_v1 = vld [vmem:[%s1858_s1 + $0x8] sm:$0xff]   ;;  %s1863_s19 = smov (!%p190_p3, %s1167_s19), 255  ;;  %v1363_v2 = vld [vmem:[%s1858_s1] sm:$0xff]   ;;  %vm450_vm0 = vcmask 392192  }
   0xc   : > { %1277 = vmatprep.subr.bf16.mxu0 %v1361_v0  ;;  %1347 = vmatprep.subr.bf16.mxu1 %v1361_v0  ;;  %s1168_s24 = sshll.u32 %s1863_s19, 2  ;;  %v1649_v35 = vld [vmem:[%s1859_s2] ss:$0 sm:$0xff]  ;;  %s1170_s6 = sshll.u32 %s1863_s19, 3 }
   0xd   : > { %1278 = vmatpush3.bf16.msra.mxu0 %v1361_v0  ;;  %1350 = vmatpush3.bf16.msra.mxu1 %v1361_v0  ;;  %s1580_s27 = scalar_lea.vmem %s1857_s0, %s1168_s24  ;;  %v1654_v37 = vld [vmem:[%s1860_s3] ss:$0 sm:$0xff]  ;;  %s1689_s9 = scalar_lea.vmem %s1861_s4, %s1170_s6 }
   0xe   : > { %1279 = vmatprep.subr.bf16.mxu0 %v1362_v1  ;;  %1348 = vmatprep.subr.bf16.mxu1 %v1362_v1  ;;  %v1364_v3 = vld [vmem:[%s1580_s27] sm:$0xff]   ;;  %v1366_v5 = vld [vmem:[%s1580_s27 + $0x8] sm:$0xff]   ;;  %v1368_v7 = vld [vmem:[%s1580_s27 + $0x10] sm:$0xff]  }
   0xf   : > { %v1365_v4 = vld [vmem:[%s1580_s27 + $0x80] sm:$0xff]   ;;  %1283 = vmatprep.mubr.msk.bf16.mxu0 %vm450_vm0, %v1364_v3  ;;  %v1367_v6 = vld [vmem:[%s1580_s27 + $0x88] sm:$0xff]   ;;  %v1369_v8 = vld [vmem:[%s1580_s27 + $0x90] sm:$0xff]  }
  0x10   : > { %1315 = vmatprep.mubr.msk.bf16.mxu1 %vm450_vm0, %v1365_v4  ;;  %v1370_v9 = vld [vmem:[%s1580_s27 + $0x18] sm:$0xff]   ;;  %v1372_v11 = vld [vmem:[%s1580_s27 + $0x20] sm:$0xff]   ;;  %v1374_v13 = vld [vmem:[%s1580_s27 + $0x28] sm:$0xff]  }
  0x11   : > { %1280 = vmatpush3.bf16.msra.mxu0 %v1362_v1  ;;  %1351 = vmatpush3.bf16.msra.mxu1 %v1362_v1  ;;  %v1371_v10 = vld [vmem:[%s1580_s27 + $0x98] sm:$0xff]   ;;  %v1373_v12 = vld [vmem:[%s1580_s27 + $0xa0] sm:$0xff]   ;;  %v1375_v14 = vld [vmem:[%s1580_s27 + $0xa8] sm:$0xff]  }
  0x12   : > { %1281 = vmatprep.subr.bf16.mxu0 %v1363_v2  ;;  %1349 = vmatprep.subr.bf16.mxu1 %v1363_v2  ;;  %v1376_v15 = vld [vmem:[%s1580_s27 + $0x30] sm:$0xff]   ;;  %v1378_v17 = vld [vmem:[%s1580_s27 + $0x38] sm:$0xff]   ;;  %v1380_v19 = vld [vmem:[%s1580_s27 + $0x40] sm:$0xff]  }
  0x13   : > { %v1377_v16 = vld [vmem:[%s1580_s27 + $0xb0] sm:$0xff]   ;;  %v1379_v18 = vld [vmem:[%s1580_s27 + $0xb8] sm:$0xff]   ;;  %v1381_v20 = vld [vmem:[%s1580_s27 + $0xc0] sm:$0xff]  }
  0x14   : > { %v1382_v21 = vld [vmem:[%s1580_s27 + $0x48] sm:$0xff]   ;;  %v1384_v23 = vld [vmem:[%s1580_s27 + $0x50] sm:$0xff]   ;;  %v1386_v25 = vld [vmem:[%s1580_s27 + $0x58] sm:$0xff]  }
  0x15   : > { %1282 = vmatpush3.bf16.msra.mxu0 %v1363_v2  ;;  %1352 = vmatpush3.bf16.msra.mxu1 %v1363_v2  ;;  %v1383_v22 = vld [vmem:[%s1580_s27 + $0xc8] sm:$0xff]   ;;  %v1385_v24 = vld [vmem:[%s1580_s27 + $0xd0] sm:$0xff]   ;;  %v1387_v26 = vld [vmem:[%s1580_s27 + $0xd8] sm:$0xff]  }
  0x16   : > { %v1388_v27 = vld [vmem:[%s1580_s27 + $0x60] sm:$0xff]   ;;  %v1390_v29 = vld [vmem:[%s1580_s27 + $0x68] sm:$0xff]   ;;  %v1392_v31 = vld [vmem:[%s1580_s27 + $0x70] sm:$0xff]  }
  0x17   : > { %v1389_v28 = vld [vmem:[%s1580_s27 + $0xe0] sm:$0xff]   ;;  %v1391_v30 = vld [vmem:[%s1580_s27 + $0xe8] sm:$0xff]   ;;  %v1393_v32 = vld [vmem:[%s1580_s27 + $0xf0] sm:$0xff]  }
  0x18   : > { %1284 = vmatmul.mubr.msk.bf16.vlgmr.msra.gmra.mxu0 %vm450_vm0, %v1366_v5  ;;  %1316 = vmatmul.mubr.msk.bf16.vlgmr.msra.gmra.mxu1 %vm450_vm0, %v1367_v6  ;;  %v1394_v33 = vld [vmem:[%s1580_s27 + $0x78] sm:$0xff]  }
  0x19   : > { %1287 = vmatprep.mubr.msk.bf16.mxu0 %vm450_vm0, %v1368_v7  ;;  %1319 = vmatprep.mubr.msk.bf16.mxu1 %vm450_vm0, %v1369_v8  ;;  %v1395_v34 = vld [vmem:[%s1580_s27 + $0xf8] sm:$0xff]  }
  0x20   : > { %1288 = vmatmul.mubr.msk.bf16.gmra.mxu0 %vm450_vm0, %v1370_v9  ;;  %1320 = vmatmul.mubr.msk.bf16.gmra.mxu1 %vm450_vm0, %v1371_v10 }
  0x21   : > { %1291 = vmatprep.mubr.msk.bf16.mxu0 %vm450_vm0, %v1372_v11  ;;  %1323 = vmatprep.mubr.msk.bf16.mxu1 %vm450_vm0, %v1373_v12 }
  0x28   : > { %1292 = vmatmul.mubr.msk.bf16.gmra.mxu0 %vm450_vm0, %v1374_v13  ;;  %1324 = vmatmul.mubr.msk.bf16.gmra.mxu1 %vm450_vm0, %v1375_v14 }
  0x29   : > { %1295 = vmatprep.mubr.msk.bf16.mxu0 %vm450_vm0, %v1376_v15  ;;  %1327 = vmatprep.mubr.msk.bf16.mxu1 %vm450_vm0, %v1377_v16 }
  0x30   : > { %1296 = vmatmul.mubr.msk.bf16.gmra.mxu0 %vm450_vm0, %v1378_v17  ;;  %1328 = vmatmul.mubr.msk.bf16.gmra.mxu1 %vm450_vm0, %v1379_v18 }
  0x31   : > { %1299 = vmatprep.mubr.msk.bf16.mxu0 %vm450_vm0, %v1380_v19  ;;  %1331 = vmatprep.mubr.msk.bf16.mxu1 %vm450_vm0, %v1381_v20 }
  0x38   : > { %1300 = vmatmul.mubr.msk.bf16.gmra.mxu0 %vm450_vm0, %v1382_v21  ;;  %1332 = vmatmul.mubr.msk.bf16.gmra.mxu1 %vm450_vm0, %v1383_v22 }
  0x39   : > { %1303 = vmatprep.mubr.msk.bf16.mxu0 %vm450_vm0, %v1384_v23  ;;  %1335 = vmatprep.mubr.msk.bf16.mxu1 %vm450_vm0, %v1385_v24 }
  0x40   : > { %1304 = vmatmul.mubr.msk.bf16.gmra.mxu0 %vm450_vm0, %v1386_v25  ;;  %1336 = vmatmul.mubr.msk.bf16.gmra.mxu1 %vm450_vm0, %v1387_v26 }
  0x41   : > { %1307 = vmatprep.mubr.msk.bf16.mxu0 %vm450_vm0, %v1388_v27  ;;  %1339 = vmatprep.mubr.msk.bf16.mxu1 %vm450_vm0, %v1389_v28 }
  0x48   : > { %1308 = vmatmul.mubr.msk.bf16.gmra.mxu0 %vm450_vm0, %v1390_v29  ;;  %1340 = vmatmul.mubr.msk.bf16.gmra.mxu1 %vm450_vm0, %v1391_v30 }
  0x49   : > { %1311 = vmatprep.mubr.msk.bf16.mxu0 %vm450_vm0, %v1392_v31  ;;  %1343 = vmatprep.mubr.msk.bf16.mxu1 %vm450_vm0, %v1393_v32 }
  0x50   : > { %1312 = vmatmul.mubr.msk.bf16.gmra.mxu0 %vm450_vm0, %v1394_v33  ;;  %1344 = vmatmul.mubr.msk.bf16.gmra.mxu1 %vm450_vm0, %v1395_v34 }
  0xd8   : > { %v1285_v36 = vpop.f32.mrf.mxu0  ;;  %v1317_v38 = vpop.f32.mrf.mxu1 }
  0xd9   : > { %v845_v39 = vmul.f32 %v1285_v36, %v1649_v35  ;;  %v877_v40 = vmul.f32 %v1317_v38, %v1649_v35 }
  0xda   : > { %v581_v41 = vpop.f32.mrf.mxu0  ;;  %v709_v42 = vpop.f32.mrf.mxu1 }
  0xdb   : > { %v916_v43 = vadd.f32 %v1654_v37, %v845_v39  ;;  %v948_v44 = vadd.f32 %v1654_v37, %v877_v40  ;;  %v843_v45 = vmul.f32 %v1649_v35, %v581_v41  ;;  %v875_v46 = vmul.f32 %v1649_v35, %v709_v42 }
  0xdc   : > { %v1286_v47 = vpop.f32.mrf.mxu0  ;;  %v1318_v48 = vpop.f32.mrf.mxu1 }
  0xdd   : > { %1396 = vtanh.f32 %v916_v43  ;;  %v914_v49 = vadd.f32 %v1654_v37, %v843_v45  ;;  %v946_v50 = vadd.f32 %v1654_v37, %v875_v46  ;;  %v846_v51 = vmul.f32 %v1286_v47, %v1649_v35 }
  0xde   : > { %1398 = vtanh.f32 %v948_v44  ;;  %v878_v52 = vmul.f32 %v1318_v48, %v1649_v35  ;;  %v584_v53 = vpop.f32.mrf.mxu0  ;;  %v712_v54 = vpop.f32.mrf.mxu1 }
  0xdf   : > { %1400 = vtanh.f32 %v914_v49  ;;  %v917_v55 = vadd.f32 %v1654_v37, %v846_v51  ;;  %v844_v56 = vmul.f32 %v1649_v35, %v584_v53  ;;  %v876_v57 = vmul.f32 %v1649_v35, %v712_v54 }
  0xe0   : > { %1402 = vtanh.f32 %v946_v50  ;;  %v949_v58 = vadd.f32 %v1654_v37, %v878_v52  ;;  %v1289_v59 = vpop.f32.mrf.mxu0  ;;  %v1321_v60 = vpop.f32.mrf.mxu1 }
  0xe1   : > { %1404 = vtanh.f32 %v917_v55  ;;  %v915_v61 = vadd.f32 %v1654_v37, %v844_v56  ;;  %v947_v62 = vadd.f32 %v1654_v37, %v876_v57  ;;  %v849_v63 = vmul.f32 %v1289_v59, %v1649_v35 }
  0xe2   : > { %1406 = vtanh.f32 %v949_v58  ;;  %v881_v0 = vmul.f32 %v1321_v60, %v1649_v35  ;;  %v597_v1 = vpop.f32.mrf.mxu0  ;;  %v725_v2 = vpop.f32.mrf.mxu1 }
  0xe3   : > { %1408 = vtanh.f32 %v915_v61  ;;  %v920_v3 = vadd.f32 %v1654_v37, %v849_v63  ;;  %v847_v4 = vmul.f32 %v1649_v35, %v597_v1  ;;  %v879_v5 = vmul.f32 %v1649_v35, %v725_v2 }
  0xe4   : > { %1410 = vtanh.f32 %v947_v62  ;;  %v952_v6 = vadd.f32 %v1654_v37, %v881_v0  ;;  %v1290_v7 = vpop.f32.mrf.mxu0  ;;  %v1322_v8 = vpop.f32.mrf.mxu1 }
  0xe5   : > { %1412 = vtanh.f32 %v920_v3  ;;  %v918_v9 = vadd.f32 %v1654_v37, %v847_v4  ;;  %v950_v10 = vadd.f32 %v1654_v37, %v879_v5  ;;  %v850_v11 = vmul.f32 %v1290_v7, %v1649_v35 }
  0xe6   : > { %1414 = vtanh.f32 %v952_v6  ;;  %v882_v12 = vmul.f32 %v1322_v8, %v1649_v35  ;;  %v600_v13 = vpop.f32.mrf.mxu0  ;;  %v728_v14 = vpop.f32.mrf.mxu1 }
  0xe7   : > { %1416 = vtanh.f32 %v918_v9  ;;  %v921_v15 = vadd.f32 %v1654_v37, %v850_v11  ;;  %v848_v16 = vmul.f32 %v1649_v35, %v600_v13  ;;  %v880_v17 = vmul.f32 %v1649_v35, %v728_v14 }
  0xe8   : > { %1418 = vtanh.f32 %v950_v10  ;;  %v953_v18 = vadd.f32 %v1654_v37, %v882_v12  ;;  %v1293_v19 = vpop.f32.mrf.mxu0  ;;  %v1325_v20 = vpop.f32.mrf.mxu1 }
  0xe9   : > { %1420 = vtanh.f32 %v921_v15  ;;  %v919_v21 = vadd.f32 %v1654_v37, %v848_v16  ;;  %v951_v22 = vadd.f32 %v1654_v37, %v880_v17  ;;  %v853_v23 = vmul.f32 %v1293_v19, %v1649_v35 }
  0xea   : > { %v1397_v24 = vpop.eup %1396  ;;  %1422 = vtanh.f32 %v953_v18  ;;  %v885_v25 = vmul.f32 %v1325_v20, %v1649_v35  ;;  %v613_v26 = vpop.f32.mrf.mxu0 }
  0xeb   : > { %v741_v27 = vpop.f32.mrf.mxu1  ;;  %v1399_v28 = vpop.eup %1398  ;;  %1044 = vst [vmem:[%s1689_s9 + $0x10] sm:$0xff] %v1397_v24  ;;  %1424 = vtanh.f32 %v919_v21  ;;  %v924_v29 = vadd.f32 %v1654_v37, %v853_v23  ;;  %v851_v30 = vmul.f32 %v1649_v35, %v613_v26 }
  0xec   : > { %v883_v31 = vmul.f32 %v1649_v35, %v741_v27  ;;  %v1401_v32 = vpop.eup %1400  ;;  %1076 = vst [vmem:[%s1689_s9 + $0x110] sm:$0xff] %v1399_v28  ;;  %1426 = vtanh.f32 %v951_v22  ;;  %v956_v33 = vadd.f32 %v1654_v37, %v885_v25  ;;  %v1294_v34 = vpop.f32.mrf.mxu0 }
  0xed   : > { %v1326_v36 = vpop.f32.mrf.mxu1  ;;  %v1403_v38 = vpop.eup %1402  ;;  %1042 = vst [vmem:[%s1689_s9] sm:$0xff] %v1401_v32  ;;  %1428 = vtanh.f32 %v924_v29  ;;  %v922_v39 = vadd.f32 %v1654_v37, %v851_v30  ;;  %v854_v41 = vmul.f32 %v1294_v34, %v1649_v35 }
  0xee   : > { %v954_v40 = vadd.f32 %v1654_v37, %v883_v31  ;;  %v1405_v42 = vpop.eup %1404  ;;  %1074 = vst [vmem:[%s1689_s9 + $0x100] sm:$0xff] %v1403_v38  ;;  %1430 = vtanh.f32 %v956_v33  ;;  %v886_v43 = vmul.f32 %v1326_v36, %v1649_v35  ;;  %v616_v44 = vpop.f32.mrf.mxu0 }
  0xef   : > { %v744_v45 = vpop.f32.mrf.mxu1  ;;  %v1407_v46 = vpop.eup %1406  ;;  %1045 = vst [vmem:[%s1689_s9 + $0x18] sm:$0xff] %v1405_v42  ;;  %1432 = vtanh.f32 %v922_v39  ;;  %v925_v47 = vadd.f32 %v1654_v37, %v854_v41  ;;  %v852_v48 = vmul.f32 %v1649_v35, %v616_v44 }
  0xf0   : > { %v884_v49 = vmul.f32 %v1649_v35, %v744_v45  ;;  %v1409_v50 = vpop.eup %1408  ;;  %1077 = vst [vmem:[%s1689_s9 + $0x118] sm:$0xff] %v1407_v46  ;;  %1434 = vtanh.f32 %v954_v40  ;;  %v957_v51 = vadd.f32 %v1654_v37, %v886_v43  ;;  %v1297_v52 = vpop.f32.mrf.mxu0 }
  0xf1   : > { %v1329_v53 = vpop.f32.mrf.mxu1  ;;  %v1411_v54 = vpop.eup %1410  ;;  %1043 = vst [vmem:[%s1689_s9 + $0x8] sm:$0xff] %v1409_v50  ;;  %1436 = vtanh.f32 %v925_v47  ;;  %v923_v55 = vadd.f32 %v1654_v37, %v852_v48  ;;  %v857_v57 = vmul.f32 %v1297_v52, %v1649_v35 }
  0xf2   : > { %v955_v56 = vadd.f32 %v1654_v37, %v884_v49  ;;  %v1413_v58 = vpop.eup %1412  ;;  %1075 = vst [vmem:[%s1689_s9 + $0x108] sm:$0xff] %v1411_v54  ;;  %1438 = vtanh.f32 %v957_v51  ;;  %v889_v59 = vmul.f32 %v1329_v53, %v1649_v35  ;;  %v629_v60 = vpop.f32.mrf.mxu0 }
  0xf3   : > { %v757_v61 = vpop.f32.mrf.mxu1  ;;  %v1415_v62 = vpop.eup %1414  ;;  %1048 = vst [vmem:[%s1689_s9 + $0x30] sm:$0xff] %v1413_v58  ;;  %1440 = vtanh.f32 %v923_v55  ;;  %v928_v63 = vadd.f32 %v1654_v37, %v857_v57  ;;  %v855_v0 = vmul.f32 %v1649_v35, %v629_v60 }
  0xf4   : > { %v887_v1 = vmul.f32 %v1649_v35, %v757_v61  ;;  %v1417_v2 = vpop.eup %1416  ;;  %1080 = vst [vmem:[%s1689_s9 + $0x130] sm:$0xff] %v1415_v62  ;;  %1442 = vtanh.f32 %v955_v56  ;;  %v960_v3 = vadd.f32 %v1654_v37, %v889_v59  ;;  %v1298_v4 = vpop.f32.mrf.mxu0 }
  0xf5   : > { %v1330_v5 = vpop.f32.mrf.mxu1  ;;  %v1419_v6 = vpop.eup %1418  ;;  %1046 = vst [vmem:[%s1689_s9 + $0x20] sm:$0xff] %v1417_v2  ;;  %1444 = vtanh.f32 %v928_v63  ;;  %v926_v7 = vadd.f32 %v1654_v37, %v855_v0  ;;  %v858_v9 = vmul.f32 %v1298_v4, %v1649_v35 }
  0xf6   : > { %v958_v8 = vadd.f32 %v1654_v37, %v887_v1  ;;  %v1421_v10 = vpop.eup %1420  ;;  %1078 = vst [vmem:[%s1689_s9 + $0x120] sm:$0xff] %v1419_v6  ;;  %1446 = vtanh.f32 %v960_v3  ;;  %v890_v11 = vmul.f32 %v1330_v5, %v1649_v35  ;;  %v632_v12 = vpop.f32.mrf.mxu0 }
  0xf7   : > { %v760_v13 = vpop.f32.mrf.mxu1  ;;  %v1423_v14 = vpop.eup %1422  ;;  %1049 = vst [vmem:[%s1689_s9 + $0x38] sm:$0xff] %v1421_v10  ;;  %1448 = vtanh.f32 %v926_v7  ;;  %v929_v15 = vadd.f32 %v1654_v37, %v858_v9  ;;  %v856_v16 = vmul.f32 %v1649_v35, %v632_v12 }
  0xf8   : > { %v888_v17 = vmul.f32 %v1649_v35, %v760_v13  ;;  %v1425_v18 = vpop.eup %1424  ;;  %1081 = vst [vmem:[%s1689_s9 + $0x138] sm:$0xff] %v1423_v14  ;;  %1450 = vtanh.f32 %v958_v8  ;;  %v961_v19 = vadd.f32 %v1654_v37, %v890_v11  ;;  %v1301_v20 = vpop.f32.mrf.mxu0 }
  0xf9   : > { %v1333_v21 = vpop.f32.mrf.mxu1  ;;  %v1427_v22 = vpop.eup %1426  ;;  %1047 = vst [vmem:[%s1689_s9 + $0x28] sm:$0xff] %v1425_v18  ;;  %1452 = vtanh.f32 %v929_v15  ;;  %v927_v23 = vadd.f32 %v1654_v37, %v856_v16  ;;  %v861_v25 = vmul.f32 %v1301_v20, %v1649_v35 }
  0xfa   : > { %v959_v24 = vadd.f32 %v1654_v37, %v888_v17  ;;  %v1429_v26 = vpop.eup %1428  ;;  %1079 = vst [vmem:[%s1689_s9 + $0x128] sm:$0xff] %v1427_v22  ;;  %1454 = vtanh.f32 %v961_v19  ;;  %v893_v27 = vmul.f32 %v1333_v21, %v1649_v35  ;;  %v645_v28 = vpop.f32.mrf.mxu0 }
  0xfb   : > { %v773_v29 = vpop.f32.mrf.mxu1  ;;  %v1431_v30 = vpop.eup %1430  ;;  %1052 = vst [vmem:[%s1689_s9 + $0x50] sm:$0xff] %v1429_v26  ;;  %1456 = vtanh.f32 %v927_v23  ;;  %v932_v31 = vadd.f32 %v1654_v37, %v861_v25  ;;  %v859_v32 = vmul.f32 %v1649_v35, %v645_v28 }
  0xfc   : > { %v891_v33 = vmul.f32 %v1649_v35, %v773_v29  ;;  %v1433_v34 = vpop.eup %1432  ;;  %1084 = vst [vmem:[%s1689_s9 + $0x150] sm:$0xff] %v1431_v30  ;;  %1458 = vtanh.f32 %v959_v24  ;;  %v964_v36 = vadd.f32 %v1654_v37, %v893_v27  ;;  %v1302_v38 = vpop.f32.mrf.mxu0 }
  0xfd   : > { %v1334_v39 = vpop.f32.mrf.mxu1  ;;  %v1435_v40 = vpop.eup %1434  ;;  %1050 = vst [vmem:[%s1689_s9 + $0x40] sm:$0xff] %v1433_v34  ;;  %1460 = vtanh.f32 %v932_v31  ;;  %v930_v41 = vadd.f32 %v1654_v37, %v859_v32  ;;  %v862_v43 = vmul.f32 %v1302_v38, %v1649_v35 }
  0xfe   : > { %v962_v42 = vadd.f32 %v1654_v37, %v891_v33  ;;  %v1437_v44 = vpop.eup %1436  ;;  %1082 = vst [vmem:[%s1689_s9 + $0x140] sm:$0xff] %v1435_v40  ;;  %1462 = vtanh.f32 %v964_v36  ;;  %v894_v45 = vmul.f32 %v1334_v39, %v1649_v35  ;;  %v648_v46 = vpop.f32.mrf.mxu0 }
  0xff   : > { %v776_v47 = vpop.f32.mrf.mxu1  ;;  %v1439_v48 = vpop.eup %1438  ;;  %1053 = vst [vmem:[%s1689_s9 + $0x58] sm:$0xff] %v1437_v44  ;;  %1464 = vtanh.f32 %v930_v41  ;;  %v933_v49 = vadd.f32 %v1654_v37, %v862_v43  ;;  %v860_v50 = vmul.f32 %v1649_v35, %v648_v46 }
 0x100   : > { %v892_v51 = vmul.f32 %v1649_v35, %v776_v47  ;;  %v1441_v52 = vpop.eup %1440  ;;  %1085 = vst [vmem:[%s1689_s9 + $0x158] sm:$0xff] %v1439_v48  ;;  %1466 = vtanh.f32 %v962_v42  ;;  %v965_v53 = vadd.f32 %v1654_v37, %v894_v45  ;;  %v1305_v54 = vpop.f32.mrf.mxu0 }
 0x101   : > { %v1337_v55 = vpop.f32.mrf.mxu1  ;;  %v1443_v56 = vpop.eup %1442  ;;  %1051 = vst [vmem:[%s1689_s9 + $0x48] sm:$0xff] %v1441_v52  ;;  %1468 = vtanh.f32 %v933_v49  ;;  %v931_v57 = vadd.f32 %v1654_v37, %v860_v50  ;;  %v865_v59 = vmul.f32 %v1305_v54, %v1649_v35 }
 0x102   : > { %v963_v58 = vadd.f32 %v1654_v37, %v892_v51  ;;  %v1445_v60 = vpop.eup %1444  ;;  %1083 = vst [vmem:[%s1689_s9 + $0x148] sm:$0xff] %v1443_v56  ;;  %1470 = vtanh.f32 %v965_v53  ;;  %v897_v61 = vmul.f32 %v1337_v55, %v1649_v35  ;;  %v661_v62 = vpop.f32.mrf.mxu0 }
 0x103   : > { %v789_v63 = vpop.f32.mrf.mxu1  ;;  %v1447_v0 = vpop.eup %1446  ;;  %1056 = vst [vmem:[%s1689_s9 + $0x70] sm:$0xff] %v1445_v60  ;;  %1472 = vtanh.f32 %v931_v57  ;;  %v936_v1 = vadd.f32 %v1654_v37, %v865_v59  ;;  %v863_v2 = vmul.f32 %v1649_v35, %v661_v62 }
 0x104   : > { %v895_v3 = vmul.f32 %v1649_v35, %v789_v63  ;;  %v1449_v4 = vpop.eup %1448  ;;  %1088 = vst [vmem:[%s1689_s9 + $0x170] sm:$0xff] %v1447_v0  ;;  %1474 = vtanh.f32 %v963_v58  ;;  %v968_v5 = vadd.f32 %v1654_v37, %v897_v61  ;;  %v1306_v6 = vpop.f32.mrf.mxu0 }
 0x105   : > { %v1338_v7 = vpop.f32.mrf.mxu1  ;;  %v1451_v8 = vpop.eup %1450  ;;  %1054 = vst [vmem:[%s1689_s9 + $0x60] sm:$0xff] %v1449_v4  ;;  %1476 = vtanh.f32 %v936_v1  ;;  %v934_v9 = vadd.f32 %v1654_v37, %v863_v2  ;;  %v866_v11 = vmul.f32 %v1306_v6, %v1649_v35 }
 0x106   : > { %v966_v10 = vadd.f32 %v1654_v37, %v895_v3  ;;  %v1453_v12 = vpop.eup %1452  ;;  %1086 = vst [vmem:[%s1689_s9 + $0x160] sm:$0xff] %v1451_v8  ;;  %1478 = vtanh.f32 %v968_v5  ;;  %v898_v13 = vmul.f32 %v1338_v7, %v1649_v35  ;;  %v664_v14 = vpop.f32.mrf.mxu0 }
 0x107   : > { %v792_v15 = vpop.f32.mrf.mxu1  ;;  %v1455_v16 = vpop.eup %1454  ;;  %1057 = vst [vmem:[%s1689_s9 + $0x78] sm:$0xff] %v1453_v12  ;;  %1480 = vtanh.f32 %v934_v9  ;;  %v937_v17 = vadd.f32 %v1654_v37, %v866_v11  ;;  %v864_v18 = vmul.f32 %v1649_v35, %v664_v14 }
 0x108   : > { %v896_v19 = vmul.f32 %v1649_v35, %v792_v15  ;;  %v1457_v20 = vpop.eup %1456  ;;  %1089 = vst [vmem:[%s1689_s9 + $0x178] sm:$0xff] %v1455_v16  ;;  %1482 = vtanh.f32 %v966_v10  ;;  %v969_v21 = vadd.f32 %v1654_v37, %v898_v13  ;;  %v1309_v22 = vpop.f32.mrf.mxu0 }
 0x109   : > { %v1341_v23 = vpop.f32.mrf.mxu1  ;;  %v1459_v24 = vpop.eup %1458  ;;  %1055 = vst [vmem:[%s1689_s9 + $0x68] sm:$0xff] %v1457_v20  ;;  %1484 = vtanh.f32 %v937_v17  ;;  %v935_v25 = vadd.f32 %v1654_v37, %v864_v18  ;;  %v869_v27 = vmul.f32 %v1309_v22, %v1649_v35 }
 0x10a   : > { %v967_v26 = vadd.f32 %v1654_v37, %v896_v19  ;;  %v1461_v28 = vpop.eup %1460  ;;  %1087 = vst [vmem:[%s1689_s9 + $0x168] sm:$0xff] %v1459_v24  ;;  %1486 = vtanh.f32 %v969_v21  ;;  %v901_v29 = vmul.f32 %v1341_v23, %v1649_v35  ;;  %v677_v30 = vpop.f32.mrf.mxu0 }
 0x10b   : > { %v805_v31 = vpop.f32.mrf.mxu1  ;;  %v1463_v32 = vpop.eup %1462  ;;  %1060 = vst [vmem:[%s1689_s9 + $0x90] sm:$0xff] %v1461_v28  ;;  %1488 = vtanh.f32 %v935_v25  ;;  %v940_v33 = vadd.f32 %v1654_v37, %v869_v27  ;;  %v867_v34 = vmul.f32 %v1649_v35, %v677_v30 }
 0x10c   : > { %v899_v36 = vmul.f32 %v1649_v35, %v805_v31  ;;  %v1465_v38 = vpop.eup %1464  ;;  %1092 = vst [vmem:[%s1689_s9 + $0x190] sm:$0xff] %v1463_v32  ;;  %1490 = vtanh.f32 %v967_v26  ;;  %v972_v39 = vadd.f32 %v1654_v37, %v901_v29  ;;  %v1310_v40 = vpop.f32.mrf.mxu0 }
 0x10d   : > { %v1342_v41 = vpop.f32.mrf.mxu1  ;;  %v1467_v42 = vpop.eup %1466  ;;  %1058 = vst [vmem:[%s1689_s9 + $0x80] sm:$0xff] %v1465_v38  ;;  %1492 = vtanh.f32 %v940_v33  ;;  %v938_v43 = vadd.f32 %v1654_v37, %v867_v34  ;;  %v870_v45 = vmul.f32 %v1310_v40, %v1649_v35 }
 0x10e   : > { %v970_v44 = vadd.f32 %v1654_v37, %v899_v36  ;;  %v1469_v46 = vpop.eup %1468  ;;  %1090 = vst [vmem:[%s1689_s9 + $0x180] sm:$0xff] %v1467_v42  ;;  %1494 = vtanh.f32 %v972_v39  ;;  %v902_v47 = vmul.f32 %v1342_v41, %v1649_v35  ;;  %v680_v48 = vpop.f32.mrf.mxu0 }
 0x10f   : > { %v808_v49 = vpop.f32.mrf.mxu1  ;;  %v1471_v50 = vpop.eup %1470  ;;  %1061 = vst [vmem:[%s1689_s9 + $0x98] sm:$0xff] %v1469_v46  ;;  %1496 = vtanh.f32 %v938_v43  ;;  %v941_v51 = vadd.f32 %v1654_v37, %v870_v45  ;;  %v868_v52 = vmul.f32 %v1649_v35, %v680_v48 }
 0x110   : > { %v900_v53 = vmul.f32 %v1649_v35, %v808_v49  ;;  %v1473_v54 = vpop.eup %1472  ;;  %1093 = vst [vmem:[%s1689_s9 + $0x198] sm:$0xff] %v1471_v50  ;;  %1498 = vtanh.f32 %v970_v44  ;;  %v973_v55 = vadd.f32 %v1654_v37, %v902_v47  ;;  %v1313_v56 = vpop.f32.mrf.mxu0 }
 0x111   : > { %v1345_v57 = vpop.f32.mrf.mxu1  ;;  %v1475_v58 = vpop.eup %1474  ;;  %1059 = vst [vmem:[%s1689_s9 + $0x88] sm:$0xff] %v1473_v54  ;;  %1500 = vtanh.f32 %v941_v51  ;;  %v939_v59 = vadd.f32 %v1654_v37, %v868_v52  ;;  %v873_v61 = vmul.f32 %v1313_v56, %v1649_v35 }
 0x112   : > { %v971_v60 = vadd.f32 %v1654_v37, %v900_v53  ;;  %v1477_v62 = vpop.eup %1476  ;;  %1091 = vst [vmem:[%s1689_s9 + $0x188] sm:$0xff] %v1475_v58  ;;  %1502 = vtanh.f32 %v973_v55  ;;  %v905_v63 = vmul.f32 %v1345_v57, %v1649_v35  ;;  %v693_v0 = vpop.f32.mrf.mxu0 }
 0x113   : > { %v821_v1 = vpop.f32.mrf.mxu1  ;;  %v1479_v2 = vpop.eup %1478  ;;  %1064 = vst [vmem:[%s1689_s9 + $0xb0] sm:$0xff] %v1477_v62  ;;  %1504 = vtanh.f32 %v939_v59  ;;  %v944_v3 = vadd.f32 %v1654_v37, %v873_v61  ;;  %v871_v4 = vmul.f32 %v1649_v35, %v693_v0 }
 0x114   : > { %v903_v5 = vmul.f32 %v1649_v35, %v821_v1  ;;  %v1481_v6 = vpop.eup %1480  ;;  %1096 = vst [vmem:[%s1689_s9 + $0x1b0] sm:$0xff] %v1479_v2  ;;  %1506 = vtanh.f32 %v971_v60  ;;  %v976_v7 = vadd.f32 %v1654_v37, %v905_v63  ;;  %v1314_v8 = vpop.f32.mrf.mxu0 }
 0x115   : > { %v1346_v9 = vpop.f32.mrf.mxu1  ;;  %v1483_v10 = vpop.eup %1482  ;;  %1062 = vst [vmem:[%s1689_s9 + $0xa0] sm:$0xff] %v1481_v6  ;;  %1508 = vtanh.f32 %v944_v3  ;;  %v942_v11 = vadd.f32 %v1654_v37, %v871_v4  ;;  %v874_v13 = vmul.f32 %v1314_v8, %v1649_v35 }
 0x116   : > { %v974_v12 = vadd.f32 %v1654_v37, %v903_v5  ;;  %v1485_v14 = vpop.eup %1484  ;;  %1094 = vst [vmem:[%s1689_s9 + $0x1a0] sm:$0xff] %v1483_v10  ;;  %1510 = vtanh.f32 %v976_v7  ;;  %v906_v15 = vmul.f32 %v1346_v9, %v1649_v35  ;;  %v696_v16 = vpop.f32.mrf.mxu0 }
 0x117   : > { %v824_v17 = vpop.f32.mrf.mxu1  ;;  %v1487_v18 = vpop.eup %1486  ;;  %1065 = vst [vmem:[%s1689_s9 + $0xb8] sm:$0xff] %v1485_v14  ;;  %1512 = vtanh.f32 %v942_v11  ;;  %v945_v19 = vadd.f32 %v1654_v37, %v874_v13  ;;  %v872_v20 = vmul.f32 %v1649_v35, %v696_v16 }
 0x118   : > { %v904_v21 = vmul.f32 %v1649_v35, %v824_v17  ;;  %v1489_v22 = vpop.eup %1488  ;;  %1097 = vst [vmem:[%s1689_s9 + $0x1b8] sm:$0xff] %v1487_v18  ;;  %1514 = vtanh.f32 %v974_v12  ;;  %v977_v23 = vadd.f32 %v1654_v37, %v906_v15 }
 0x119   : > { %v1491_v24 = vpop.eup %1490  ;;  %1063 = vst [vmem:[%s1689_s9 + $0xa8] sm:$0xff] %v1489_v22  ;;  %1516 = vtanh.f32 %v945_v19  ;;  %v943_v25 = vadd.f32 %v1654_v37, %v872_v20 }
 0x11a   : > { %v975_v26 = vadd.f32 %v1654_v37, %v904_v21  ;;  %v1493_v27 = vpop.eup %1492  ;;  %1095 = vst [vmem:[%s1689_s9 + $0x1a8] sm:$0xff] %v1491_v24  ;;  %1518 = vtanh.f32 %v977_v23 }
 0x11b   : > { %v1495_v35 = vpop.eup %1494  ;;  %1068 = vst [vmem:[%s1689_s9 + $0xd0] sm:$0xff] %v1493_v27  ;;  %1520 = vtanh.f32 %v943_v25 }
 0x11c   : > { %v1497_v28 = vpop.eup %1496  ;;  %1100 = vst [vmem:[%s1689_s9 + $0x1d0] sm:$0xff] %v1495_v35  ;;  %1522 = vtanh.f32 %v975_v26 }
 0x11d   : > { %v1499_v29 = vpop.eup %1498  ;;  %1066 = vst [vmem:[%s1689_s9 + $0xc0] sm:$0xff] %v1497_v28 }
 0x11e   : > { %v1501_v30 = vpop.eup %1500  ;;  %1098 = vst [vmem:[%s1689_s9 + $0x1c0] sm:$0xff] %v1499_v29 }
 0x11f   : > { %v1503_v37 = vpop.eup %1502  ;;  %1069 = vst [vmem:[%s1689_s9 + $0xd8] sm:$0xff] %v1501_v30 }
 0x120   : > { %v1505_v31 = vpop.eup %1504  ;;  %1101 = vst [vmem:[%s1689_s9 + $0x1d8] sm:$0xff] %v1503_v37 }
 0x121   : > { %v1507_v32 = vpop.eup %1506  ;;  %1067 = vst [vmem:[%s1689_s9 + $0xc8] sm:$0xff] %v1505_v31 }
 0x122   : > { %v1509_v33 = vpop.eup %1508  ;;  %1099 = vst [vmem:[%s1689_s9 + $0x1c8] sm:$0xff] %v1507_v32 }
 0x123   : > { %v1511_v34 = vpop.eup %1510  ;;  %1072 = vst [vmem:[%s1689_s9 + $0xf0] sm:$0xff] %v1509_v33 }
 0x124   : > { %v1513_v36 = vpop.eup %1512  ;;  %1104 = vst [vmem:[%s1689_s9 + $0x1f0] sm:$0xff] %v1511_v34 }
 0x125   : > { %v1515_v38 = vpop.eup %1514  ;;  %1070 = vst [vmem:[%s1689_s9 + $0xe0] sm:$0xff] %v1513_v36 }
 0x126   : > { %v1517_v39 = vpop.eup %1516  ;;  %1102 = vst [vmem:[%s1689_s9 + $0x1e0] sm:$0xff] %v1515_v38 }
 0x127   : > { %v1519_v40 = vpop.eup %1518  ;;  %1073 = vst [vmem:[%s1689_s9 + $0xf8] sm:$0xff] %v1517_v39 }
 0x128   : > { %v1521_v41 = vpop.eup %1520  ;;  %1105 = vst [vmem:[%s1689_s9 + $0x1f8] sm:$0xff] %v1519_v40 }
 0x129   : > { %v1523_v42 = vpop.eup %1522  ;;  %1071 = vst [vmem:[%s1689_s9 + $0xe8] sm:$0xff] %v1521_v41 }
 0x12a   : > { %1103 = vst [vmem:[%s1689_s9 + $0x1e8] sm:$0xff] %v1523_v42 }
 0x12b PF: > { %s14_s15 = sadd.s32 1, %s1530_s15  }
 0x12c   : > { %p11_p4 = scmp.ge.s32.totalorder %s14_s15, 6  }
 0x12e   :  { %13 = sbr.rel (!%p11_p4) target bundleno = 1 (0x1), region = 66 }

</bundles_post_ra>
